<compile_context>
chip_gen: v5e
topology: v5e:2x2
jax: 0.10.0
libtpu: 0.0.40
codegen_flags: <defaults>
</compile_context>

<pallas_src>
import functools
import numpy as np
import jax
import jax.numpy as jnp
from jax import lax
from jax.experimental import pallas as pl
from jax.experimental.pallas import tpu as pltpu

MAX_ROWS = 256  # MXU M tile on v6e/v7x (also fine on v5e: 2 x 128 passes)


def _vmem_capacity_bytes():
    try:
        return int(pltpu.get_tpu_info().vmem_capacity_bytes)
    except Exception:
        return 64 << 20  # conservative: v7x per-TC VMEM


def _pick_rows(B, N, budget):
    """Rows (batch) per grid step: wide enough to feed the MXU, >=2 grid steps
    for moderate batches (v7x megacore), and small enough that the per-step
    batch tiles stay within half of the VMEM budget."""
    if B <= 8:
        rows = 8
    elif B >= 2 * MAX_ROWS:
        rows = MAX_ROWS
    else:
        half = -(-B // 2)
        rows = min(MAX_ROWS, -(-half // 8) * 8)

    def tile_bytes(r):
        # bf16 atom slab (x2 bufs) + f32 output (x2 bufs) + f32 accumulator + shifts
        return 2 * r * N * 2 + 3 * r * N * 4 + 2 * r * 4

    while rows > 8 and tile_bytes(rows) > budget // 2:
        rows = max(8, ((rows // 2) + 7) // 8 * 8)
    return rows


@functools.lru_cache(maxsize=None)
def _build_fft_shift_matrices(N, K):
    """bf16 real-DFT matrices for fft_shift (norm='ortho') at signal length 3N.

    Returns Fw (2, N, K) = [cos ; -sin] forward rows (zero-trimmed to the first
    N input samples) and Iv (2, K, N) = Hermitian-folded inverse weights.
    Columns/rows with k >= n_coeffs are zeroed (K is lane/tile padded)."""
    assert N % 2 == 0, "odd n_samples changes torch.irfft's implicit output length"
    L = 3 * N                              # F.pad(a, (0, 2*N)) -> length 3N
    nc = L // 2 + 1                        # rfft bins
    assert K >= nc
    scale = 1.0 / np.sqrt(L)

    n = np.arange(N, dtype=np.float64)[:, None]
    k = np.arange(K, dtype=np.float64)[None, :]
    valid = (k < nc).astype(np.float64)
    ang = 2.0 * np.pi * n * k / L
    Cf = np.cos(ang) * scale * valid
    Sf = -np.sin(ang) * scale * valid
    Fw = np.stack([Cf, Sf], axis=0)        # (2, N, K): [re ; im]

    kk = np.arange(K, dtype=np.float64)[:, None]
    mm = np.arange(N, dtype=np.float64)[None, :]
    nyq = (L % 2 == 0) & (kk == L // 2)    # Nyquist exists for even L
    w = np.where((kk == 0) | nyq, 1.0, 2.0) * (kk < nc)
    ang_i = 2.0 * np.pi * kk * mm / L
    CiC = w * np.cos(ang_i) * scale
    CiS = -w * np.sin(ang_i) * scale
    Iv = np.stack([CiC, CiS], axis=0)      # (2, K, N): [re ; im]

    return (jnp.asarray(Fw, dtype=jnp.bfloat16),
            jnp.asarray(Iv, dtype=jnp.bfloat16),
            nc)


def _make_kernel(N, nc, TK, KT):
    # angle(k) = 2*pi * k * shift_samples / nc,  shift_samples = shift * N / 3
    inv_nc = 1.0 / float(nc)
    samp_scale = float(N) / 3.0
    two_pi = 2.0 * np.pi

    def fft_shift_kernel(shift_ref, a_ref, fw_ref, iv_ref, o_ref, acc_ref):
        kt = pl.program_id(1)

        @pl.when(kt == 0)
        def _():
            acc_ref[...] = jnp.zeros_like(acc_ref)

        # forward rfft (ortho) of the zero-padded signal, one K tile
        a = a_ref[...]                                               # (ROWS, N) bf16
        sre = jnp.dot(a, fw_ref[0], preferred_element_type=jnp.float32)  # (ROWS, TK)
        sim = jnp.dot(a, fw_ref[1], preferred_element_type=jnp.float32)

        # per-row phase ramp exp(-i * 2*pi * k * shift_samples / nc)
        # (f32 EUP; kept f32 on all generations for accuracy -- see review note)
        shift_samples = shift_ref[...] * samp_scale                  # (ROWS, 1) f32
        k_idx = (kt * TK
                 + lax.broadcasted_iota(jnp.int32, (1, TK), 1)).astype(jnp.float32)
        turns = (shift_samples * inv_nc) * k_idx                     # (ROWS, TK)
        turns = turns - jnp.floor(turns)                             # mod-2pi reduction
        phi = two_pi * turns
        pr = jnp.cos(phi)
        pim = -jnp.sin(phi)

        y_re = (sre * pr - sim * pim).astype(jnp.bfloat16)
        y_im = (sre * pim + sim * pr).astype(jnp.bfloat16)

        # inverse rfft (ortho), first N samples: two dots, f32 accumulation
        acc_ref[...] += (jnp.dot(y_re, iv_ref[0], preferred_element_type=jnp.float32)
                         + jnp.dot(y_im, iv_ref[1], preferred_element_type=jnp.float32))

        @pl.when(kt == KT - 1)
        def _():
            o_ref[...] = acc_ref[...]

    return fft_shift_kernel


def fft_shift_pallas(atoms, shifts, n_samples, *, force_tk=None):
    """Batched fft_shift: atoms (B, n_atom<=N) f32, shifts (B,) f32 -> (B, N) f32."""
    N = int(n_samples)
    atoms = jnp.asarray(atoms, jnp.float32)
    shifts = jnp.asarray(shifts, jnp.float32).reshape(-1)
    B = atoms.shape[0]
    assert shifts.shape[0] == B
    assert atoms.shape[1] <= N

    cap = _vmem_capacity_bytes()
    budget = int(cap * 0.8)

    ROWS = _pick_rows(B, N, budget)
    G = -(-B // ROWS)                      # cdiv
    BP = G * ROWS

    L = 3 * N
    nc = L // 2 + 1
    K_min = ((nc + 127) // 128) * 128      # lane-aligned spectrum width

    fixed = (2 * ROWS * N * 2              # bf16 atom slab, double-buffered
             + 2 * ROWS * 4                # shifts
             + 3 * ROWS * N * 4            # f32 output (x2 bufs) + accumulator
             + (2 << 20))                  # compiler scratch headroom
    avail = max(budget - fixed, 2 << 20)

    if force_tk is not None:
        TK = int(force_tk)
        assert TK % 128 == 0
    elif 8 * N * K_min <= avail:           # single-buffered constants fit entirely
        TK = K_min
    else:                                  # double-buffered K tiles
        TK = max(128, (avail // (16 * N)) // 128 * 128)
    KT = -(-K_min // TK)
    K = KT * TK
    # TODO(synk): for very large n_samples (e.g. the module's 2**15) even a
    # TK=128 inverse-DFT tile (8*N*TK bytes) outgrows VMEM; an additional
    # output-N grid axis would be required there.

    Fw, Iv, _ = _build_fft_shift_matrices(N, K)

    # Pad + cast in one step: build the bf16 slab directly (no f32 staging copy).
    a_slab = (jnp.zeros((BP, N), jnp.bfloat16)
              .at[:B, :atoms.shape[1]].set(atoms.astype(jnp.bfloat16))
              .reshape(G, ROWS, N))
    s_slab = (jnp.zeros((BP,), jnp.float32).at[:B].set(shifts)
              .reshape(G, ROWS, 1))

    vmem_limit = int(min(max(2 * 8 * N * TK + fixed + (4 << 20), 16 << 20),
                         cap * 0.9))

    kernel = _make_kernel(N, nc, TK, KT)

    def _call(single_buffer_consts):
        const_kwargs = ({"pipeline_mode": pl.Buffered(1)}
                        if single_buffer_consts else {})
        return pl.pallas_call(
            kernel,
            out_shape=jax.ShapeDtypeStruct((G, ROWS, N), jnp.float32),
            grid=(G, KT),
            in_specs=[
                pl.BlockSpec((None, ROWS, 1), lambda g, kt: (g, 0, 0)),   # shifts
                pl.BlockSpec((None, ROWS, N), lambda g, kt: (g, 0, 0)),   # atom slab
                pl.BlockSpec((2, N, TK), lambda g, kt: (0, 0, kt),        # forward DFT
                             **const_kwargs),
                pl.BlockSpec((2, TK, N), lambda g, kt: (0, kt, 0),        # inverse DFT
                             **const_kwargs),
            ],
            out_specs=pl.BlockSpec((None, ROWS, N), lambda g, kt: (g, 0, 0)),
            scratch_shapes=[pltpu.VMEM((ROWS, N), jnp.float32)],
            compiler_params=pltpu.CompilerParams(
                dimension_semantics=("parallel", "arbitrary"),
                vmem_limit_bytes=vmem_limit),
        )(s_slab, a_slab, Fw, Iv)

    if KT == 1:
        # constant block index -> single-buffer the DFT matrices; fall back to
        # default double-buffering if this JAX build rejects Buffered(1).
        try:
            out = _call(True)
        except Exception:
            out = _call(False)
    else:
        out = _call(False)
    return out.reshape(BP, N)[:B]


def model_forward(atom, shift, n_samples):
    """Mirrors Model.forward(): returns (fft_shift(pad(atom, N), shift), shift)."""
    x = fft_shift_pallas(atom[None, :], jnp.reshape(shift, (1,)), n_samples)[0]
    return x, shift


if __name__ == "__main__":
    key = jax.random.PRNGKey(0)
    atom_len, N = 64, 128                          # small synthetic shapes
    k1, k2, k3 = jax.random.split(key, 3)

    def reference(atoms_b, shifts_b):
        a_buf = (jnp.zeros((atoms_b.shape[0], N), jnp.float32)
                 .at[:, :atoms_b.shape[1]].set(atoms_b))
        a_sig = jnp.pad(a_buf, ((0, 0), (0, 2 * N)))
        spec = jnp.fft.rfft(a_sig, axis=-1, norm="ortho")
        nc = spec.shape[-1]
        ph = jnp.exp(-(jnp.arange(nc) * 2j * jnp.pi / nc)[None, :]
                     * (shifts_b * N / 3.0)[:, None])
        return jnp.fft.irfft(spec * ph, axis=-1, norm="ortho")[:, :N]

    def check(got, want, name):
        got = np.asarray(got)
        want = np.asarray(want)
        l2 = np.linalg.norm(got - want) / (np.linalg.norm(want) + 1e-12)
        assert l2 < 1e-2, (name, l2)
        assert np.allclose(got, want, atol=2e-2, rtol=2e-2), name  # bf16-MXU tol

    # 1) Module-equivalent call: single atom, shift parameter = 0.5.
    atom = jax.random.normal(k1, (atom_len,), dtype=jnp.float32)
    shift0 = jnp.full((1,), 0.5, jnp.float32)
    x0, s0 = model_forward(atom, shift0, N)
    jax.block_until_ready((x0, s0))
    assert x0.shape == (N,) and s0.shape == (1,)
    check(x0, reference(atom[None, :], shift0)[0], "model_forward")

    # 2) Batched call exercising the wide M tile + 2-step "parallel" batch grid.
    B = 272
    atoms = jax.random.normal(k2, (B, atom_len), dtype=jnp.float32)
    shifts = jax.random.uniform(k3, (B,), dtype=jnp.float32)
    x = fft_shift_pallas(atoms, shifts, N)
    jax.block_until_ready(x)
    assert x.shape == (B, N)
    ref = reference(atoms, shifts)
    check(x, ref, "batched")

    # 3) Force the K-tiled reduction path (TK=128 -> KT=2, accumulator + pl.when).
    x_kt = fft_shift_pallas(atoms[:8], shifts[:8], N, force_tk=128)
    jax.block_until_ready(x_kt)
    check(x_kt, ref[:8], "k_tiled")

    print("KERNEL_OK")
</pallas_src>

<mosaic_0001>
module attributes {stable_mosaic.version = 11 : i64} {
  func.func @fft_shift_kernel(%arg0: i32, %arg1: i32, %arg2: memref<1x8x1xf32, #tpu.memory_space<vmem>>, %arg3: memref<1x8x128xbf16, #tpu.memory_space<vmem>>, %arg4: memref<2x128x256xbf16, #tpu.memory_space<vmem>>, %arg5: memref<2x256x128xbf16, #tpu.memory_space<vmem>>, %arg6: memref<1x8x128xf32, #tpu.memory_space<vmem>>, %arg7: memref<8x128xf32, #tpu.memory_space<vmem>>) attributes {dimension_semantics = [#tpu.dimension_semantics<parallel>, #tpu.dimension_semantics<arbitrary>], iteration_bounds = array<i64: 1, 1>, scalar_prefetch = 0 : i64, scratch_operands = 1 : i64, tpu.core_type = #tpu.core_type<tc>, window_params = [{transform_indices = @transform_0, window_bounds = array<i64: 1, 8, 1>}, {transform_indices = @transform_1, window_bounds = array<i64: 1, 8, 128>}, {pipeline_mode = #tpu.pipeline_mode<synchronous>, transform_indices = @transform_2, window_bounds = array<i64: 2, 128, 256>}, {pipeline_mode = #tpu.pipeline_mode<synchronous>, transform_indices = @transform_3, window_bounds = array<i64: 2, 256, 128>}, {transform_indices = @transform_4, window_bounds = array<i64: 1, 8, 128>}]} {
    %c0_i32 = arith.constant 0 : i32
    %0 = arith.cmpi eq, %arg1, %c0_i32 : i32
    %1 = arith.extui %0 : i1 to i32
    %c0_i32_0 = arith.constant 0 : i32
    %2 = arith.cmpi ne, %1, %c0_i32_0 : i32
    scf.if %2 {
      %cst_30 = arith.constant 0.000000e+00 : f32
      %54 = vector.broadcast %cst_30 : f32 to vector<8x128xf32>
      %c0_31 = arith.constant 0 : index
      %c0_32 = arith.constant 0 : index
      %55 = vector.load %arg7[%c0_31, %c0_32] : memref<8x128xf32, #tpu.memory_space<vmem>>, vector<8x128xf32>
      tpu.vector_store %arg7[%c0_31, %c0_32], %54 {strides = array<i32>} : memref<8x128xf32, #tpu.memory_space<vmem>>, vector<8x128xf32>,
    } else {
    }
    %c0 = arith.constant 0 : index
    %c0_1 = arith.constant 0 : index
    %c0_2 = arith.constant 0 : index
    %3 = vector.load %arg3[%c0, %c0_1, %c0_2] : memref<1x8x128xbf16, #tpu.memory_space<vmem>>, vector<1x8x128xbf16>
    %4 = vector.shape_cast %3 : vector<1x8x128xbf16> to vector<8x128xbf16>
    %c0_3 = arith.constant 0 : index
    %c0_4 = arith.constant 0 : index
    %c0_5 = arith.constant 0 : index
    %5 = vector.load %arg4[%c0_3, %c0_4, %c0_5] : memref<2x128x256xbf16, #tpu.memory_space<vmem>>, vector<1x128x256xbf16>
    %6 = vector.shape_cast %5 : vector<1x128x256xbf16> to vector<128x256xbf16>
    %cst = arith.constant dense<0.000000e+00> : vector<8x256xf32>
    %7 = tpu.matmul %4, %6, %cst {dimension_numbers = #tpu.dot_dimension_numbers<[1], [0], [0], [1], [0, 0, 1, 1], [], []>} : vector<8x128xbf16>, vector<128x256xbf16>, vector<8x256xf32> -> vector<8x256xf32>
    %c1 = arith.constant 1 : index
    %c0_6 = arith.constant 0 : index
    %c0_7 = arith.constant 0 : index
    %8 = vector.load %arg4[%c1, %c0_6, %c0_7] : memref<2x128x256xbf16, #tpu.memory_space<vmem>>, vector<1x128x256xbf16>
    %9 = vector.shape_cast %8 : vector<1x128x256xbf16> to vector<128x256xbf16>
    %cst_8 = arith.constant dense<0.000000e+00> : vector<8x256xf32>
    %10 = tpu.matmul %4, %9, %cst_8 {dimension_numbers = #tpu.dot_dimension_numbers<[1], [0], [0], [1], [0, 0, 1, 1], [], []>} : vector<8x128xbf16>, vector<128x256xbf16>, vector<8x256xf32> -> vector<8x256xf32>
    %c0_9 = arith.constant 0 : index
    %c0_10 = arith.constant 0 : index
    %c0_11 = arith.constant 0 : index
    %11 = vector.load %arg2[%c0_9, %c0_10, %c0_11] : memref<1x8x1xf32, #tpu.memory_space<vmem>>, vector<1x8x1xf32>
    %12 = vector.shape_cast %11 : vector<1x8x1xf32> to vector<8x1xf32>
    %cst_12 = arith.constant 42.6666679 : f32
    %13 = vector.broadcast %cst_12 : f32 to vector<8x1xf32>
    %14 = arith.mulf %12, %13 : vector<8x1xf32>
    %c256_i32 = arith.constant 256 : i32
    %15 = arith.muli %arg1, %c256_i32 : i32
    %16 = tpu.iota {dimensions = array<i32: 1>} : vector<1x256xi32>
    %17 = vector.broadcast %15 : i32 to vector<1x256xi32>
    %18 = arith.addi %17, %16 : vector<1x256xi32>
    %19 = arith.sitofp %18 : vector<1x256xi32> to vector<1x256xf32>
    %cst_13 = arith.constant 0.00518134702 : f32
    %20 = vector.broadcast %cst_13 : f32 to vector<8x1xf32>
    %21 = arith.mulf %14, %20 : vector<8x1xf32>
    %22 = vector.broadcast %21 : vector<8x1xf32> to vector<8x256xf32>
    %23 = vector.broadcast %19 : vector<1x256xf32> to vector<8x256xf32>
    %24 = arith.mulf %22, %23 : vector<8x256xf32>
    %25 = math.floor %24 : vector<8x256xf32>
    %26 = arith.subf %24, %25 : vector<8x256xf32>
    %cst_14 = arith.constant 6.28318548 : f32
    %27 = vector.broadcast %cst_14 : f32 to vector<8x256xf32>
    %28 = arith.mulf %27, %26 : vector<8x256xf32>
    %29 = math.cos %28 : vector<8x256xf32>
    %30 = math.sin %28 : vector<8x256xf32>
    %cst_15 = arith.constant 0.000000e+00 : f32
    %31 = vector.broadcast %cst_15 : f32 to vector<8x256xf32>
    %32 = arith.subf %31, %30 : vector<8x256xf32>
    %33 = arith.mulf %7, %29 : vector<8x256xf32>
    %34 = arith.mulf %10, %32 : vector<8x256xf32>
    %35 = arith.subf %33, %34 : vector<8x256xf32>
    %36 = arith.truncf %35 : vector<8x256xf32> to vector<8x256xbf16>
    %37 = arith.mulf %7, %32 : vector<8x256xf32>
    %38 = arith.mulf %10, %29 : vector<8x256xf32>
    %39 = arith.addf %37, %38 : vector<8x256xf32>
    %40 = arith.truncf %39 : vector<8x256xf32> to vector<8x256xbf16>
    %c0_16 = arith.constant 0 : index
    %c0_17 = arith.constant 0 : index
    %41 = vector.load %arg7[%c0_16, %c0_17] : memref<8x128xf32, #tpu.memory_space<vmem>>, vector<8x128xf32>
    %c0_18 = arith.constant 0 : index
    %c0_19 = arith.constant 0 : index
    %c0_20 = arith.constant 0 : index
    %42 = vector.load %arg5[%c0_18, %c0_19, %c0_20] : memref<2x256x128xbf16, #tpu.memory_space<vmem>>, vector<1x256x128xbf16>
    %43 = vector.shape_cast %42 : vector<1x256x128xbf16> to vector<256x128xbf16>
    %cst_21 = arith.constant dense<0.000000e+00> : vector<8x128xf32>
    %44 = tpu.matmul %36, %43, %cst_21 {dimension_numbers = #tpu.dot_dimension_numbers<[1], [0], [0], [1], [0, 0, 1, 1], [], []>} : vector<8x256xbf16>, vector<256x128xbf16>, vector<8x128xf32> -> vector<8x128xf32>
    %c1_22 = arith.constant 1 : index
    %c0_23 = arith.constant 0 : index
    %c0_24 = arith.constant 0 : index
    %45 = vector.load %arg5[%c1_22, %c0_23, %c0_24] : memref<2x256x128xbf16, #tpu.memory_space<vmem>>, vector<1x256x128xbf16>
    %46 = vector.shape_cast %45 : vector<1x256x128xbf16> to vector<256x128xbf16>
    %cst_25 = arith.constant dense<0.000000e+00> : vector<8x128xf32>
    %47 = tpu.matmul %40, %46, %cst_25 {dimension_numbers = #tpu.dot_dimension_numbers<[1], [0], [0], [1], [0, 0, 1, 1], [], []>} : vector<8x256xbf16>, vector<256x128xbf16>, vector<8x128xf32> -> vector<8x128xf32>
    %48 = arith.addf %44, %47 : vector<8x128xf32>
    %49 = arith.addf %41, %48 : vector<8x128xf32>
    %c0_26 = arith.constant 0 : index
    %c0_27 = arith.constant 0 : index
    %50 = vector.load %arg7[%c0_26, %c0_27] : memref<8x128xf32, #tpu.memory_space<vmem>>, vector<8x128xf32>
    tpu.vector_store %arg7[%c0_26, %c0_27], %49 {strides = array<i32>} : memref<8x128xf32, #tpu.memory_space<vmem>>, vector<8x128xf32>,
    %c0_i32_28 = arith.constant 0 : i32
    %51 = arith.cmpi eq, %arg1, %c0_i32_28 : i32
    %52 = arith.extui %51 : i1 to i32
    %c0_i32_29 = arith.constant 0 : i32
    %53 = arith.cmpi ne, %52, %c0_i32_29 : i32
    scf.if %53 {
      %c0_30 = arith.constant 0 : index
      %c0_31 = arith.constant 0 : index
      %54 = vector.load %arg7[%c0_30, %c0_31] : memref<8x128xf32, #tpu.memory_space<vmem>>, vector<8x128xf32>
      %c0_32 = arith.constant 0 : index
      %c0_33 = arith.constant 0 : index
      %c0_34 = arith.constant 0 : index
      %55 = vector.load %arg6[%c0_32, %c0_33, %c0_34] : memref<1x8x128xf32, #tpu.memory_space<vmem>>, vector<1x8x128xf32>
      %56 = vector.shape_cast %55 : vector<1x8x128xf32> to vector<8x128xf32>
      %57 = vector.shape_cast %54 : vector<8x128xf32> to vector<1x8x128xf32>
      tpu.vector_store %arg6[%c0_32, %c0_33, %c0_34], %57 {strides = array<i32>} : memref<1x8x128xf32, #tpu.memory_space<vmem>>, vector<1x8x128xf32>,
    } else {
    }
    return
  }
  func.func @transform_0(%arg0: i32, %arg1: i32) -> (i32, i32, i32) {
    %c0_i32 = arith.constant 0 : i32
    %c0_i32_0 = arith.constant 0 : i32
    %c0_i32_1 = arith.constant 0 : i32
    return %arg0, %c0_i32, %c0_i32_0 : i32, i32, i32
  }
  func.func @transform_1(%arg0: i32, %arg1: i32) -> (i32, i32, i32) {
    %c0_i32 = arith.constant 0 : i32
    %c0_i32_0 = arith.constant 0 : i32
    %c0_i32_1 = arith.constant 0 : i32
    return %arg0, %c0_i32, %c0_i32_0 : i32, i32, i32
  }
  func.func @transform_2(%arg0: i32, %arg1: i32) -> (i32, i32, i32) {
    %c0_i32 = arith.constant 0 : i32
    %c0_i32_0 = arith.constant 0 : i32
    %c0_i32_1 = arith.constant 0 : i32
    return %c0_i32, %c0_i32_0, %arg1 : i32, i32, i32
  }
  func.func @transform_3(%arg0: i32, %arg1: i32) -> (i32, i32, i32) {
    %c0_i32 = arith.constant 0 : i32
    %c0_i32_0 = arith.constant 0 : i32
    %c0_i32_1 = arith.constant 0 : i32
    return %c0_i32, %arg1, %c0_i32_0 : i32, i32, i32
  }
  func.func @transform_4(%arg0: i32, %arg1: i32) -> (i32, i32, i32) {
    %c0_i32 = arith.constant 0 : i32
    %c0_i32_0 = arith.constant 0 : i32
    %c0_i32_1 = arith.constant 0 : i32
    return %arg0, %c0_i32, %c0_i32_0 : i32, i32, i32
  }
}

module attributes {stable_mosaic.version = 11 : i64} {
  func.func @fft_shift_kernel(%arg0: i32, %arg1: i32, %arg2: memref<1x8x1xf32, #tpu.memory_space<vmem>>, %arg3: memref<1x8x128xbf16, #tpu.memory_space<vmem>>, %arg4: memref<2x128x256xbf16, #tpu.memory_space<vmem>>, %arg5: memref<2x256x128xbf16, #tpu.memory_space<vmem>>, %arg6: memref<1x8x128xf32, #tpu.memory_space<vmem>>, %arg7: memref<8x128xf32, #tpu.memory_space<vmem>>) attributes {dimension_semantics = [#tpu.dimension_semantics<parallel>, #tpu.dimension_semantics<arbitrary>], iteration_bounds = array<i64: 1, 1>, scalar_prefetch = 0 : i64, scratch_operands = 1 : i64, tpu.core_type = #tpu.core_type<tc>, window_params = [{transform_indices = @transform_0, window_bounds = array<i64: 1, 8, 1>}, {transform_indices = @transform_1, window_bounds = array<i64: 1, 8, 128>}, {transform_indices = @transform_2, window_bounds = array<i64: 2, 128, 256>}, {transform_indices = @transform_3, window_bounds = array<i64: 2, 256, 128>}, {transform_indices = @transform_4, window_bounds = array<i64: 1, 8, 128>}]} {
    %c0_i32 = arith.constant 0 : i32
    %0 = arith.cmpi eq, %arg1, %c0_i32 : i32
    %1 = arith.extui %0 : i1 to i32
    %c0_i32_0 = arith.constant 0 : i32
    %2 = arith.cmpi ne, %1, %c0_i32_0 : i32
    scf.if %2 {
      %cst_30 = arith.constant 0.000000e+00 : f32
      %54 = vector.broadcast %cst_30 : f32 to vector<8x128xf32>
      %c0_31 = arith.constant 0 : index
      %c0_32 = arith.constant 0 : index
      %55 = vector.load %arg7[%c0_31, %c0_32] : memref<8x128xf32, #tpu.memory_space<vmem>>, vector<8x128xf32>
      tpu.vector_store %arg7[%c0_31, %c0_32], %54 {strides = array<i32>} : memref<8x128xf32, #tpu.memory_space<vmem>>, vector<8x128xf32>,
    } else {
    }
    %c0 = arith.constant 0 : index
    %c0_1 = arith.constant 0 : index
    %c0_2 = arith.constant 0 : index
    %3 = vector.load %arg3[%c0, %c0_1, %c0_2] : memref<1x8x128xbf16, #tpu.memory_space<vmem>>, vector<1x8x128xbf16>
    %4 = vector.shape_cast %3 : vector<1x8x128xbf16> to vector<8x128xbf16>
    %c0_3 = arith.constant 0 : index
    %c0_4 = arith.constant 0 : index
    %c0_5 = arith.constant 0 : index
    %5 = vector.load %arg4[%c0_3, %c0_4, %c0_5] : memref<2x128x256xbf16, #tpu.memory_space<vmem>>, vector<1x128x256xbf16>
    %6 = vector.shape_cast %5 : vector<1x128x256xbf16> to vector<128x256xbf16>
    %cst = arith.constant dense<0.000000e+00> : vector<8x256xf32>
    %7 = tpu.matmul %4, %6, %cst {dimension_numbers = #tpu.dot_dimension_numbers<[1], [0], [0], [1], [0, 0, 1, 1], [], []>} : vector<8x128xbf16>, vector<128x256xbf16>, vector<8x256xf32> -> vector<8x256xf32>
    %c1 = arith.constant 1 : index
    %c0_6 = arith.constant 0 : index
    %c0_7 = arith.constant 0 : index
    %8 = vector.load %arg4[%c1, %c0_6, %c0_7] : memref<2x128x256xbf16, #tpu.memory_space<vmem>>, vector<1x128x256xbf16>
    %9 = vector.shape_cast %8 : vector<1x128x256xbf16> to vector<128x256xbf16>
    %cst_8 = arith.constant dense<0.000000e+00> : vector<8x256xf32>
    %10 = tpu.matmul %4, %9, %cst_8 {dimension_numbers = #tpu.dot_dimension_numbers<[1], [0], [0], [1], [0, 0, 1, 1], [], []>} : vector<8x128xbf16>, vector<128x256xbf16>, vector<8x256xf32> -> vector<8x256xf32>
    %c0_9 = arith.constant 0 : index
    %c0_10 = arith.constant 0 : index
    %c0_11 = arith.constant 0 : index
    %11 = vector.load %arg2[%c0_9, %c0_10, %c0_11] : memref<1x8x1xf32, #tpu.memory_space<vmem>>, vector<1x8x1xf32>
    %12 = vector.shape_cast %11 : vector<1x8x1xf32> to vector<8x1xf32>
    %cst_12 = arith.constant 42.6666679 : f32
    %13 = vector.broadcast %cst_12 : f32 to vector<8x1xf32>
    %14 = arith.mulf %12, %13 : vector<8x1xf32>
    %c256_i32 = arith.constant 256 : i32
    %15 = arith.muli %arg1, %c256_i32 : i32
    %16 = tpu.iota {dimensions = array<i32: 1>} : vector<1x256xi32>
    %17 = vector.broadcast %15 : i32 to vector<1x256xi32>
    %18 = arith.addi %17, %16 : vector<1x256xi32>
    %19 = arith.sitofp %18 : vector<1x256xi32> to vector<1x256xf32>
    %cst_13 = arith.constant 0.00518134702 : f32
    %20 = vector.broadcast %cst_13 : f32 to vector<8x1xf32>
    %21 = arith.mulf %14, %20 : vector<8x1xf32>
    %22 = vector.broadcast %21 : vector<8x1xf32> to vector<8x256xf32>
    %23 = vector.broadcast %19 : vector<1x256xf32> to vector<8x256xf32>
    %24 = arith.mulf %22, %23 : vector<8x256xf32>
    %25 = math.floor %24 : vector<8x256xf32>
    %26 = arith.subf %24, %25 : vector<8x256xf32>
    %cst_14 = arith.constant 6.28318548 : f32
    %27 = vector.broadcast %cst_14 : f32 to vector<8x256xf32>
    %28 = arith.mulf %27, %26 : vector<8x256xf32>
    %29 = math.cos %28 : vector<8x256xf32>
    %30 = math.sin %28 : vector<8x256xf32>
    %cst_15 = arith.constant 0.000000e+00 : f32
    %31 = vector.broadcast %cst_15 : f32 to vector<8x256xf32>
    %32 = arith.subf %31, %30 : vector<8x256xf32>
    %33 = arith.mulf %7, %29 : vector<8x256xf32>
    %34 = arith.mulf %10, %32 : vector<8x256xf32>
    %35 = arith.subf %33, %34 : vector<8x256xf32>
    %36 = arith.truncf %35 : vector<8x256xf32> to vector<8x256xbf16>
    %37 = arith.mulf %7, %32 : vector<8x256xf32>
    %38 = arith.mulf %10, %29 : vector<8x256xf32>
    %39 = arith.addf %37, %38 : vector<8x256xf32>
    %40 = arith.truncf %39 : vector<8x256xf32> to vector<8x256xbf16>
    %c0_16 = arith.constant 0 : index
    %c0_17 = arith.constant 0 : index
    %41 = vector.load %arg7[%c0_16, %c0_17] : memref<8x128xf32, #tpu.memory_space<vmem>>, vector<8x128xf32>
    %c0_18 = arith.constant 0 : index
    %c0_19 = arith.constant 0 : index
    %c0_20 = arith.constant 0 : index
    %42 = vector.load %arg5[%c0_18, %c0_19, %c0_20] : memref<2x256x128xbf16, #tpu.memory_space<vmem>>, vector<1x256x128xbf16>
    %43 = vector.shape_cast %42 : vector<1x256x128xbf16> to vector<256x128xbf16>
    %cst_21 = arith.constant dense<0.000000e+00> : vector<8x128xf32>
    %44 = tpu.matmul %36, %43, %cst_21 {dimension_numbers = #tpu.dot_dimension_numbers<[1], [0], [0], [1], [0, 0, 1, 1], [], []>} : vector<8x256xbf16>, vector<256x128xbf16>, vector<8x128xf32> -> vector<8x128xf32>
    %c1_22 = arith.constant 1 : index
    %c0_23 = arith.constant 0 : index
    %c0_24 = arith.constant 0 : index
    %45 = vector.load %arg5[%c1_22, %c0_23, %c0_24] : memref<2x256x128xbf16, #tpu.memory_space<vmem>>, vector<1x256x128xbf16>
    %46 = vector.shape_cast %45 : vector<1x256x128xbf16> to vector<256x128xbf16>
    %cst_25 = arith.constant dense<0.000000e+00> : vector<8x128xf32>
    %47 = tpu.matmul %40, %46, %cst_25 {dimension_numbers = #tpu.dot_dimension_numbers<[1], [0], [0], [1], [0, 0, 1, 1], [], []>} : vector<8x256xbf16>, vector<256x128xbf16>, vector<8x128xf32> -> vector<8x128xf32>
    %48 = arith.addf %44, %47 : vector<8x128xf32>
    %49 = arith.addf %41, %48 : vector<8x128xf32>
    %c0_26 = arith.constant 0 : index
    %c0_27 = arith.constant 0 : index
    %50 = vector.load %arg7[%c0_26, %c0_27] : memref<8x128xf32, #tpu.memory_space<vmem>>, vector<8x128xf32>
    tpu.vector_store %arg7[%c0_26, %c0_27], %49 {strides = array<i32>} : memref<8x128xf32, #tpu.memory_space<vmem>>, vector<8x128xf32>,
    %c0_i32_28 = arith.constant 0 : i32
    %51 = arith.cmpi eq, %arg1, %c0_i32_28 : i32
    %52 = arith.extui %51 : i1 to i32
    %c0_i32_29 = arith.constant 0 : i32
    %53 = arith.cmpi ne, %52, %c0_i32_29 : i32
    scf.if %53 {
      %c0_30 = arith.constant 0 : index
      %c0_31 = arith.constant 0 : index
      %54 = vector.load %arg7[%c0_30, %c0_31] : memref<8x128xf32, #tpu.memory_space<vmem>>, vector<8x128xf32>
      %c0_32 = arith.constant 0 : index
      %c0_33 = arith.constant 0 : index
      %c0_34 = arith.constant 0 : index
      %55 = vector.load %arg6[%c0_32, %c0_33, %c0_34] : memref<1x8x128xf32, #tpu.memory_space<vmem>>, vector<1x8x128xf32>
      %56 = vector.shape_cast %55 : vector<1x8x128xf32> to vector<8x128xf32>
      %57 = vector.shape_cast %54 : vector<8x128xf32> to vector<1x8x128xf32>
      tpu.vector_store %arg6[%c0_32, %c0_33, %c0_34], %57 {strides = array<i32>} : memref<1x8x128xf32, #tpu.memory_space<vmem>>, vector<1x8x128xf32>,
    } else {
    }
    return
  }
  func.func @transform_0(%arg0: i32, %arg1: i32) -> (i32, i32, i32) {
    %c0_i32 = arith.constant 0 : i32
    %c0_i32_0 = arith.constant 0 : i32
    %c0_i32_1 = arith.constant 0 : i32
    return %arg0, %c0_i32, %c0_i32_0 : i32, i32, i32
  }
  func.func @transform_1(%arg0: i32, %arg1: i32) -> (i32, i32, i32) {
    %c0_i32 = arith.constant 0 : i32
    %c0_i32_0 = arith.constant 0 : i32
    %c0_i32_1 = arith.constant 0 : i32
    return %arg0, %c0_i32, %c0_i32_0 : i32, i32, i32
  }
  func.func @transform_2(%arg0: i32, %arg1: i32) -> (i32, i32, i32) {
    %c0_i32 = arith.constant 0 : i32
    %c0_i32_0 = arith.constant 0 : i32
    %c0_i32_1 = arith.constant 0 : i32
    return %c0_i32, %c0_i32_0, %arg1 : i32, i32, i32
  }
  func.func @transform_3(%arg0: i32, %arg1: i32) -> (i32, i32, i32) {
    %c0_i32 = arith.constant 0 : i32
    %c0_i32_0 = arith.constant 0 : i32
    %c0_i32_1 = arith.constant 0 : i32
    return %c0_i32, %arg1, %c0_i32_0 : i32, i32, i32
  }
  func.func @transform_4(%arg0: i32, %arg1: i32) -> (i32, i32, i32) {
    %c0_i32 = arith.constant 0 : i32
    %c0_i32_0 = arith.constant 0 : i32
    %c0_i32_1 = arith.constant 0 : i32
    return %arg0, %c0_i32, %c0_i32_0 : i32, i32, i32
  }
}

</mosaic_0001>

<bundles_post_ra>
// kernel: tpu_custom_call.1
= control target key start
LH: loop header
LB: loop body
LE: loop exit
PB: predicated region body
PF: predicated region fallthrough
CT: control target
= control target key end

     0   :  { %9 = vsyncpa [#allocation4], 0  ;;  %s1978_s0 = inlined_call_operand.vmem [shape: f32[1,8,1], index: 0, kind: input, shape index: {}]   ;;  %s1979_s1 = inlined_call_operand.vmem [shape: bf16[1,8,128], index: 1, kind: input, shape index: {}]   ;;  %s1980_s2 = inlined_call_operand.hbm [shape: bf16[2,128,256], index: 2, kind: input, shape index: {}]   ;;  %s1981_s3 = inlined_call_operand.hbm [shape: bf16[2,256,128], index: 3, kind: input, shape index: {}]   ;;  %s1982_s4 = inlined_call_operand.hbm [shape: f32[1,8,128], index: 4, kind: output, shape index: {}]  }
   0x1   :  { %10 = vsyncpa [#allocation7], 0 }
   0x2   :  { %11 = vsyncpa [#allocation5], 0  ;;  %s20_s17 = sshll.u32 %s1980_s2, 4  ;;  %s1722_s18 = smov [#allocation3]   ;;  %s21_s17 = int_to_ptr.hbm [resolvable:$true] %s20_s17 }
   0x3   :  { %s22_s19 = sshll.u32 %s1722_s18, 4  ;;  %s33_s22 = sshll.u32 %s1981_s3, 4  ;;  %s23_s19 = int_to_ptr.vmem [resolvable:$true] %s22_s19  ;;  %s34_s22 = int_to_ptr.hbm [resolvable:$true] %s33_s22 }
   0x4   :  { %s1723_s23 = smov 128   ;;  %s1724_s24 = smov 8  }
   0x5   :  { %28 = dma.hbm_to_vmem [thread:$0]  %s21_s17, 4096, %s23_s19, [#allocation4], %s1723_s23, %s1723_s23, %s1724_s24  }
   0x6   :  { %s1725_s25 = smov [#allocation6]   ;;  %s1726_s27 = smov 64  }
   0x7   :  { %s35_s26 = sshll.u32 %s1725_s25, 4  ;;  %s1727_s28 = smov 4   ;;  %s36_s26 = int_to_ptr.vmem [resolvable:$true] %s35_s26 }
   0x8   :  { %41 = dma.hbm_to_vmem [thread:$0]  %s34_s22, 4096, %s36_s26, [#allocation7], %s1726_s27, %s1726_s27, %s1727_s28  }
   0x9   :  { %1716 = dma.done.wait [#allocation4], 4096  }
   0xa   :  { %1717 = vsyncadd [#allocation4], 4294963200 }
   0xb   :  { %1718 = dma.done.wait [#allocation7], 4096  }
   0xc   :  { %1719 = vsyncadd [#allocation7], 4294963200  ;;  %v1728_v0 = vmov 0   ;;  %v301_v1 = vld [vmem:[%s1978_s0] sm:$0xff]  ;;  %v1419_v2 = vld [vmem:[#allocation3 + $0xf0] sm:$0xf] }
   0xd   :  { %1643 = vset.pattern.permute.xlu0 %v1728_v0  ;;  %v1596_v3 = vld [vmem:[#allocation3 + $0xf4] sm:$0xf0]  ;;  %v302_v4 = vmul.f32 42.666668, %v301_v1  ;;  %v1595_v6 = vld [vmem:[#allocation3 + $0xf4] sm:$0xf] }
   0xe   :  { %v1420_v5 = vor.u32 %v1596_v3, %v1419_v2  ;;  %v1421_v7 = vld [vmem:[#allocation3 + $0xf8] sm:$0xf0]  ;;  %v1411_v9 = vld [vmem:[#allocation3 + $0xe0] sm:$0xf]  ;;  %v1594_v10 = vld [vmem:[#allocation3 + $0xe4] sm:$0xf0] }
   0xf   :  { %v1424_v8 = vor.u32 %v1595_v6, %v1421_v7  ;;  %v1593_v11 = vld [vmem:[#allocation3 + $0xe4] sm:$0xf]  ;;  %v312_v12 = vmul.f32 0.005181347, %v302_v4  ;;  %v1412_v13 = vor.u32 %v1594_v10, %v1411_v9  ;;  %v1413_v14 = vld [vmem:[#allocation3 + $0xe8] sm:$0xf0] }
  0x10   :  { %275 = vmatpush.bf16.msra.mxu2 %v1420_v5  ;;  %v1355_v15 = vld [vmem:[#allocation3 + $0x70] sm:$0xf]  ;;  %v1416_v16 = vor.u32 %v1593_v11, %v1413_v14  ;;  %v1580_v17 = vld [vmem:[#allocation3 + $0x74] sm:$0xf0]  ;;  %v1579_v18 = vld [vmem:[#allocation3 + $0x74] sm:$0xf] }
  0x11   :  { %288 = vmatpush.bf16.msra.mxu3 %v1424_v8  ;;  %v1357_v19 = vld [vmem:[#allocation3 + $0x78] sm:$0xf0]  ;;  %315 = vperm.xlu0 %1643, %v312_v12   ;;  %v1356_v20 = vor.u32 %v1580_v17, %v1355_v15  ;;  %v1403_v22 = vld [vmem:[#allocation3 + $0xd0] sm:$0xf]  ;;  %v1592_v23 = vld [vmem:[#allocation3 + $0xd4] sm:$0xf0] }
  0x12   :  { %v1360_v21 = vor.u32 %v1579_v18, %v1357_v19  ;;  %v1591_v24 = vld [vmem:[#allocation3 + $0xd4] sm:$0xf]  ;;  %v1405_v25 = vld [vmem:[#allocation3 + $0xd8] sm:$0xf0]  ;;  %v1347_v26 = vld [vmem:[#allocation3 + $0x60] sm:$0xf]  ;;  %v1404_v28 = vor.u32 %v1592_v23, %v1403_v22 }
  0x13   :  { %v1578_v27 = vld [vmem:[#allocation3 + $0x64] sm:$0xf0]  ;;  %152 = vmatpush.bf16.msra.mxu0 %v1356_v20  ;;  %v1577_v30 = vld [vmem:[#allocation3 + $0x64] sm:$0xf]  ;;  %v1349_v31 = vld [vmem:[#allocation3 + $0x68] sm:$0xf0]  ;;  %v1408_v33 = vor.u32 %v1591_v24, %v1405_v25 }
  0x14   :  { %276 = vmatpush.bf16.msra.mxu2 %v1412_v13  ;;  %v1348_v29 = vor.u32 %v1578_v27, %v1347_v26  ;;  %v1395_v32 = vld [vmem:[#allocation3 + $0xc0] sm:$0xf]  ;;  %165 = vmatpush.bf16.msra.mxu1 %v1360_v21  ;;  %v1352_v34 = vor.u32 %v1577_v30, %v1349_v31  ;;  %v1590_v35 = vld [vmem:[#allocation3 + $0xc4] sm:$0xf0]  ;;  %v1589_v36 = vld [vmem:[#allocation3 + $0xc4] sm:$0xf] }
  0x15   :  { %289 = vmatpush.bf16.msra.mxu3 %v1416_v16  ;;  %v1397_v37 = vld [vmem:[#allocation3 + $0xc8] sm:$0xf0]  ;;  %v1339_v38 = vld [vmem:[#allocation3 + $0x50] sm:$0xf]  ;;  %v1576_v39 = vld [vmem:[#allocation3 + $0x54] sm:$0xf0]  ;;  %v1396_v42 = vor.u32 %v1590_v35, %v1395_v32 }
  0x16   :  { %v1575_v40 = vld [vmem:[#allocation3 + $0x54] sm:$0xf]  ;;  %v1341_v41 = vld [vmem:[#allocation3 + $0x58] sm:$0xf0]  ;;  %v1340_v43 = vor.u32 %v1576_v39, %v1339_v38  ;;  %v1387_v44 = vld [vmem:[#allocation3 + $0xb0] sm:$0xf]  ;;  %v1400_v46 = vor.u32 %v1589_v36, %v1397_v37  ;;  %v304_v38 = vlaneseq }
  0x17   :  { %153 = vmatpush.bf16.msra.mxu0 %v1348_v29  ;;  %v1588_v45 = vld [vmem:[#allocation3 + $0xb4] sm:$0xf0]  ;;  %v1344_v47 = vor.u32 %v1575_v40, %v1341_v41  ;;  %v1587_v48 = vld [vmem:[#allocation3 + $0xb4] sm:$0xf]  ;;  %v1331_v49 = vld [vmem:[#allocation3 + $0x40] sm:$0xf] }
  0x18   :  { %277 = vmatpush.bf16.msra.mxu2 %v1404_v28  ;;  %166 = vmatpush.bf16.msra.mxu1 %v1352_v34  ;;  %v1574_v50 = vld [vmem:[#allocation3 + $0x44] sm:$0xf0]  ;;  %v1389_v51 = vld [vmem:[#allocation3 + $0xb8] sm:$0xf0]  ;;  %v1573_v52 = vld [vmem:[#allocation3 + $0x44] sm:$0xf]  ;;  %v1388_v54 = vor.u32 %v1588_v45, %v1387_v44 }
  0x19   :  { %290 = vmatpush.bf16.msra.mxu3 %v1408_v33  ;;  %v1333_v53 = vld [vmem:[#allocation3 + $0x48] sm:$0xf0]  ;;  %v1332_v55 = vor.u32 %v1574_v50, %v1331_v49  ;;  %v1379_v56 = vld [vmem:[#allocation3 + $0xa0] sm:$0xf]  ;;  %v1586_v57 = vld [vmem:[#allocation3 + $0xa4] sm:$0xf0]  ;;  %v1392_v58 = vor.u32 %v1587_v48, %v1389_v51 }
  0x1a   :  { %v1336_v59 = vor.u32 %v1573_v52, %v1333_v53  ;;  %v1585_v60 = vld [vmem:[#allocation3 + $0xa4] sm:$0xf]  ;;  %v1323_v61 = vld [vmem:[#allocation3 + $0x30] sm:$0xf]  ;;  %v1572_v62 = vld [vmem:[#allocation3 + $0x34] sm:$0xf0]  ;;  %v1380_v3 = vor.u32 %v1586_v57, %v1379_v56 }
  0x1b   :  { %154 = vmatpush.bf16.msra.mxu0 %v1340_v43  ;;  %v1381_v63 = vld [vmem:[#allocation3 + $0xa8] sm:$0xf0]  ;;  %v1571_v1 = vld [vmem:[#allocation3 + $0x34] sm:$0xf]  ;;  %v1325_v2 = vld [vmem:[#allocation3 + $0x38] sm:$0xf0]  ;;  %v1324_v4 = vor.u32 %v1572_v62, %v1323_v61 }
  0x1c   :  { %278 = vmatpush.bf16.msra.mxu2 %v1396_v42  ;;  %167 = vmatpush.bf16.msra.mxu1 %v1344_v47  ;;  %v1371_v5 = vld [vmem:[#allocation3 + $0x90] sm:$0xf]  ;;  %v1584_v6 = vld [vmem:[#allocation3 + $0x94] sm:$0xf0]  ;;  %v1384_v7 = vor.u32 %v1585_v60, %v1381_v63  ;;  %v1328_v8 = vor.u32 %v1571_v1, %v1325_v2  ;;  %v1583_v9 = vld [vmem:[#allocation3 + $0x94] sm:$0xf] }
  0x1d   :  { %291 = vmatpush.bf16.msra.mxu3 %v1400_v46  ;;  %v1315_v10 = vld [vmem:[#allocation3 + $0x20] sm:$0xf]  ;;  %v1570_v11 = vld [vmem:[#allocation3 + $0x24] sm:$0xf0]  ;;  %v1373_v12 = vld [vmem:[#allocation3 + $0x98] sm:$0xf0]  ;;  %v1372_v15 = vor.u32 %v1584_v6, %v1371_v5 }
  0x1e   :  { %v1569_v13 = vld [vmem:[#allocation3 + $0x24] sm:$0xf]  ;;  %v1317_v14 = vld [vmem:[#allocation3 + $0x28] sm:$0xf0]  ;;  %v1316_v16 = vor.u32 %v1570_v11, %v1315_v10  ;;  %v1363_v17 = vld [vmem:[#allocation3 + $0x80] sm:$0xf]  ;;  %v1376_v19 = vor.u32 %v1583_v9, %v1373_v12 }
  0x1f   :  { %155 = vmatpush.bf16.msra.mxu0 %v1332_v55  ;;  %v1582_v18 = vld [vmem:[#allocation3 + $0x84] sm:$0xf0]  ;;  %v1320_v20 = vor.u32 %v1569_v13, %v1317_v14  ;;  %v1581_v21 = vld [vmem:[#allocation3 + $0x84] sm:$0xf]  ;;  %v1307_v22 = vld [vmem:[#allocation3 + $0x10] sm:$0xf] }
  0x20   :  { %279 = vmatpush.bf16.msra.mxu2 %v1388_v54  ;;  %168 = vmatpush.bf16.msra.mxu1 %v1336_v59  ;;  %v1568_v23 = vld [vmem:[#allocation3 + $0x14] sm:$0xf0]  ;;  %v1365_v24 = vld [vmem:[#allocation3 + $0x88] sm:$0xf0]  ;;  %v1567_v25 = vld [vmem:[#allocation3 + $0x14] sm:$0xf]  ;;  %v1364_v27 = vor.u32 %v1582_v18, %v1363_v17 }
  0x21   :  { %292 = vmatpush.bf16.msra.mxu3 %v1392_v58  ;;  %v1309_v26 = vld [vmem:[#allocation3 + $0x18] sm:$0xf0]  ;;  %v1308_v28 = vor.u32 %v1568_v23, %v1307_v22  ;;  %v1368_v29 = vor.u32 %v1581_v21, %v1365_v24  ;;  %v1299_v31 = vld [vmem:[#allocation3] sm:$0xf]  ;;  %v1566_v32 = vld [vmem:[#allocation3 + $0x4] sm:$0xf0] }
  0x22   :  { %v1312_v30 = vor.u32 %v1567_v25, %v1309_v26  ;;  %v1565_v33 = vld [vmem:[#allocation3 + $0x4] sm:$0xf]  ;;  %v1301_v34 = vld [vmem:[#allocation3 + $0x8] sm:$0xf0]  ;;  %v55_v35 = vld [vmem:[%s1979_s1] sm:$0xf]  ;;  %v1300_v36 = vor.u32 %v1566_v32, %v1299_v31 }
  0x23   :  { %156 = vmatpush.bf16.msra.mxu0 %v1324_v4  ;;  %v1304_v37 = vor.u32 %v1565_v33, %v1301_v34  ;;  %v305_v39 = vand.u32 127, %v304_v38  ;;  %v1620_v41 = vld [vmem:[#allocation6 + $0xb8] sm:$0xff]  ;;  %v1619_v47 = vld [vmem:[#allocation6 + $0xb0] sm:$0xff]  ;;  %v1618_v54 = vld [vmem:[#allocation6 + $0xa8] sm:$0xff]  ;;  %v1729_v26 = vmov 2102212464  }
  0x24   :  { %280 = vmatpush.bf16.msra.mxu2 %v1380_v3  ;;  %169 = vmatpush.bf16.msra.mxu1 %v1328_v8  ;;  %v1628_v42 = vld [vmem:[#allocation6 + $0xf8] sm:$0xff]  ;;  %v1627_v48 = vld [vmem:[#allocation6 + $0xf0] sm:$0xff]  ;;  %v1626_v55 = vld [vmem:[#allocation6 + $0xe8] sm:$0xff]  ;;  %v1730_v31 = vmov 920167782   ;;  %s1735_s1 = smov [#allocation8]  }
  0x25   :  { %293 = vmatpush.bf16.msra.mxu3 %v1384_v7  ;;  %v306_v40 = vadd.s32 128, %v305_v39  ;;  %v1604_v43 = vld [vmem:[#allocation6 + $0x38] sm:$0xff]  ;;  %v310_v44 = vcvt.s32.f32 %v305_v39  ;;  %v1603_v49 = vld [vmem:[#allocation6 + $0x30] sm:$0xff]  ;;  %v1602_v58 = vld [vmem:[#allocation6 + $0x28] sm:$0xff]  ;;  %v1731_v34 = vmov 1326507024  }
  0x26   :  { %v1612_v46 = vld [vmem:[#allocation6 + $0x78] sm:$0xff]  ;;  %v1611_v50 = vld [vmem:[#allocation6 + $0x70] sm:$0xff]  ;;  %v1610_v59 = vld [vmem:[#allocation6 + $0x68] sm:$0xff]  ;;  %v1732_v38 = vmov 683565275   ;;  %s1284_s30 = sshll.u32 %s1735_s1, 4  ;;  %s1285_s30 = int_to_ptr.vmem [resolvable:$true] %s1284_s30 }
  0x27   :  { %157 = vmatpush.bf16.msra.mxu0 %v1316_v16  ;;  %v311_v45 = vcvt.s32.f32 %v306_v40  ;;  %v1617_v62 = vld [vmem:[#allocation6 + $0xa0] sm:$0xff]  ;;  %v1733_v40 = vmov 2475754826   ;;  %s1286_s7 = sshll.u32 %s1982_s4, 4  ;;  %s1287_s7 = int_to_ptr.hbm [resolvable:$true] %s1286_s7 }
  0x28   :  { %281 = vmatpush.bf16.msra.mxu2 %v1372_v15  ;;  %170 = vmatpush.bf16.msra.mxu1 %v1320_v20  ;;  %v1625_v63 = vld [vmem:[#allocation6 + $0xe0] sm:$0xff] }
  0x29   :  { %294 = vmatpush.bf16.msra.mxu3 %v1376_v19  ;;  %v1601_v3 = vld [vmem:[#allocation6 + $0x20] sm:$0xff] }
  0x2a   :  { %v1609_v4 = vld [vmem:[#allocation6 + $0x60] sm:$0xff] }
  0x2b   :  { %158 = vmatpush.bf16.msra.mxu0 %v1308_v28 }
  0x2c   :  { %282 = vmatpush.bf16.msra.mxu2 %v1364_v27  ;;  %171 = vmatpush.bf16.msra.mxu1 %v1312_v30 }
  0x2d   :  { %295 = vmatpush.bf16.msra.mxu3 %v1368_v29 }
  0x2f   :  { %283 = vmatmul.bf16.vlgmr.msra.gmra.mxu2 %v55_v35  ;;  %159 = vmatpush.bf16.msra.mxu0 %v1300_v36 }
  0x30   :  { %296 = vmatmul.bf16.vlgmr.msra.gmra.mxu3 %v55_v35  ;;  %172 = vmatpush.bf16.msra.mxu1 %v1304_v37 }
  0x31   :  { %1246 = vmatpush.bf16.msrb.mxu2 %v1604_v43  ;;  %1259 = vmatpush.bf16.msrb.mxu3 %v1612_v46 }
  0x32   :  { %160 = vmatmul.bf16.vlgmr.msra.gmra.mxu0 %v55_v35 }
  0x33   :  { %173 = vmatmul.bf16.vlgmr.msra.gmra.mxu1 %v55_v35  ;;  %1124 = vmatpush.bf16.msrb.mxu0 %v1620_v41 }
  0x34   :  { %1137 = vmatpush.bf16.msrb.mxu1 %v1628_v42 }
  0x35   :  { %1247 = vmatpush.bf16.msrb.mxu2 %v1603_v49  ;;  %1260 = vmatpush.bf16.msrb.mxu3 %v1611_v50 }
  0x37   :  { %1125 = vmatpush.bf16.msrb.mxu0 %v1619_v47 }
  0x38   :  { %1138 = vmatpush.bf16.msrb.mxu1 %v1627_v48 }
  0x39   :  { %1248 = vmatpush.bf16.msrb.mxu2 %v1602_v58  ;;  %1261 = vmatpush.bf16.msrb.mxu3 %v1610_v59 }
  0x3b   :  { %1126 = vmatpush.bf16.msrb.mxu0 %v1618_v54 }
  0x3c   :  { %1139 = vmatpush.bf16.msrb.mxu1 %v1626_v55 }
  0x3d   :  { %1249 = vmatpush.bf16.msrb.mxu2 %v1601_v3  ;;  %1262 = vmatpush.bf16.msrb.mxu3 %v1609_v4 }
  0x3f   :  { %1127 = vmatpush.bf16.msrb.mxu0 %v1617_v62 }
  0x40   :  { %1140 = vmatpush.bf16.msrb.mxu1 %v1625_v63 }
  0x83   :  { %v316_v51 = vpop.permute.xlu0 %315 }
  0x84   :  { %v318_v52 = vmul.f32 %v316_v51, %v310_v44  ;;  %v319_v53 = vmul.f32 %v316_v51, %v311_v45  ;;  %v1734_v45 = vmov 2131351028  }
  0x86   :  { %v320_v56 = vfloor.f32 %v318_v52  ;;  %v321_v57 = vfloor.f32 %v319_v53 }
  0x88   :  { %v322_v60 = vsub.f32 %v318_v52, %v320_v56  ;;  %v323_v61 = vsub.f32 %v319_v53, %v321_v57 }
  0x8a   :  { %v1774_v1 = vmul.f32 6.2831855, %v322_v60  ;;  %v1776_v2 = vmul.f32 6.2831855, %v323_v61 }
  0x8c   :  { %v329_v5 = vand.u32 2139095040, %v1774_v1  ;;  %v483_v6 = vand.u32 2139095040, %v1776_v2  ;;  %v326_v7 = vand.u32 2147483647, %v1774_v1  ;;  %v480_v8 = vand.u32 2147483647, %v1776_v2 }
  0x8e   :  { %v330_v9 = vshrl.u32 %v329_v5, 23  ;;  %v484_v10 = vshrl.u32 %v483_v6, 23  ;;  %v333_v11 = vand.u32 8388607, %v326_v7  ;;  %v487_v15 = vand.u32 8388607, %v480_v8 }
  0x90   :  { %v1425_v12 = vadd.s32 4294967169, %v330_v9  ;;  %v1428_v13 = vadd.s32 4294967169, %v484_v10  ;;  %v334_v14 = vor.u32 8388608, %v333_v11  ;;  %v488_v21 = vor.u32 8388608, %v487_v15 }
  0x92   :  { %v336_v16 = vadd.s32 1, %v1425_v12  ;;  %v490_v17 = vadd.s32 1, %v1428_v13  ;;  %v1786_v20 = vshll.u32 %v334_v14, 8  ;;  %v1797_v30 = vshll.u32 %v488_v21, 8 }
  0x94   :  { %vm337_vm0 = vcmp.gt.s32.totalorder %v336_v16, 0  ;;  %vm491_vm1 = vcmp.gt.s32.totalorder %v490_v17, 0  ;;  %v375_v29 = vand.u32 65535, %v1786_v20  ;;  %v376_v57 = vshrl.u32 %v1786_v20, 16 }
  0x95   :  { %v338_v18 = vsel %vm337_vm0, %v336_v16, 0  ;;  %v492_v19 = vsel %vm491_vm1, %v490_v17, 0 }
  0x96   :  { %v1788_v22 = vshrl.u32 %v338_v18, 5  ;;  %v340_v23 = vand.u32 31, %v338_v18  ;;  %v1790_v24 = vand.u32 31, %v492_v19  ;;  %v1813_v55 = vshrl.u32 %v492_v19, 5 }
  0x98   :  { %v341_v25 = vsub.s32 32, %v340_v23  ;;  %v352_v27 = vshll.u32 %v1729_v26, %v340_v23  ;;  %v1794_v28 = vsub.s32 32, %v1790_v24  ;;  %v355_v33 = vshll.u32 %v1730_v31, %v340_v23 }
  0x99   :  { %vm361_vm2 = vcmp.lt.s32.totalorder %v1788_v22, 4  ;;  %v343_v39 = vshll.u32 %v1732_v38, %v340_v23  ;;  %v346_v44 = vshll.u32 %v1733_v40, %v340_v23  ;;  %v506_v47 = vshll.u32 %v1729_v26, %v1790_v24 }
  0x9a   :  { %v353_v32 = vshrl.u32 %v1730_v31, %v341_v25  ;;  %v356_v35 = vshrl.u32 %v1731_v34, %v341_v25  ;;  %v507_v36 = vshrl.u32 %v1730_v31, %v1794_v28  ;;  %v510_v37 = vshrl.u32 %v1731_v34, %v1794_v28 }
  0x9b   :  { %v344_v41 = vshrl.u32 %v1733_v40, %v341_v25  ;;  %v347_v46 = vshrl.u32 %v1734_v45, %v341_v25  ;;  %v349_v49 = vshll.u32 %v1734_v45, %v340_v23  ;;  %v350_v50 = vshrl.u32 %v1729_v26, %v341_v25 }
  0x9c   :  { %v354_v42 = vor.u32 %v353_v32, %v352_v27  ;;  %v357_v43 = vor.u32 %v356_v35, %v355_v33  ;;  %v509_v53 = vshll.u32 %v1730_v31, %v1790_v24  ;;  %vm358_vm3 = vcmp.lt.s32.totalorder %v1788_v22, 1 }
  0x9d   :  { %v345_v48 = vor.u32 %v344_v41, %v343_v39  ;;  %v348_v54 = vor.u32 %v347_v46, %v346_v44  ;;  %v351_v56 = vor.u32 %v350_v50, %v349_v49  ;;  %v1817_v58 = vor.u32 %v507_v36, %v506_v47 }
  0x9e   :  { %v367_v51 = vsel %vm361_vm2, %v354_v42, 920167782  ;;  %v371_v52 = vsel %vm361_vm2, %v357_v43, 1326507024  ;;  %v511_v59 = vor.u32 %v510_v37, %v509_v53  ;;  %vm360_vm4 = vcmp.lt.s32.totalorder %v1788_v22, 3 }
  0x9f   :  { %v366_v60 = vsel %vm358_vm3, %v345_v48, %v348_v54  ;;  %vm359_vm5 = vcmp.lt.s32.totalorder %v1788_v22, 2  ;;  %v368_v61 = vsel %vm360_vm4, %v351_v56, %v367_v51  ;;  %v370_v62 = vsel %vm358_vm3, %v348_v54, %v351_v56 }
  0xa0   :  { %v372_v63 = vsel %vm360_vm4, %v354_v42, %v371_v52  ;;  %v342_v3 = vshrl.u32 %v1732_v38, %v341_v25  ;;  %v363_v4 = vsel %vm361_vm2, %v351_v56, 2102212464  ;;  %v369_v5 = vsel %vm359_vm5, %v366_v60, %v368_v61 }
  0xa1   :  { %v373_v6 = vsel %vm359_vm5, %v370_v62, %v372_v63  ;;  %vm515_vm6 = vcmp.lt.s32.totalorder %v1813_v55, 4  ;;  %v399_v11 = vand.u32 65535, %v369_v5  ;;  %v400_v15 = vshrl.u32 %v369_v5, 16 }
  0xa2   :  { %v377_v9 = vand.u32 65535, %v373_v6  ;;  %v378_v10 = vshrl.u32 %v373_v6, 16  ;;  %v521_v12 = vsel %vm515_vm6, %v1817_v58, 920167782  ;;  %v525_v13 = vsel %vm515_vm6, %v511_v59, 1326507024 }
  0xa3   :  { %v362_v14 = vsel %vm358_vm3, %v342_v3, %v345_v48  ;;  %v364_v16 = vsel %vm360_vm4, %v348_v54, %v363_v4  ;;  %v497_v19 = vshll.u32 %v1732_v38, %v1790_v24  ;;  %v402_v21 = vmul.u32 %v400_v15, %v375_v29 }
  0xa4   :  { %v380_v17 = vmul.u32 %v378_v10, %v375_v29  ;;  %v381_v18 = vmul.u32 %v377_v9, %v376_v57  ;;  %v403_v23 = vmul.u32 %v399_v11, %v376_v57  ;;  %v498_v25 = vshrl.u32 %v1733_v40, %v1794_v28 }
  0xa5   :  { %v500_v27 = vshll.u32 %v1733_v40, %v1790_v24  ;;  %v379_v31 = vmul.u32 %v377_v9, %v375_v29  ;;  %v382_v32 = vmul.u32 %v378_v10, %v376_v57  ;;  %v401_v34 = vmul.u32 %v399_v11, %v375_v29 }
  0xa6   :  { %v383_v33 = vshll.u32 %v380_v17, 16  ;;  %v384_v35 = vshrl.u32 %v380_v17, 16  ;;  %v385_v36 = vshll.u32 %v381_v18, 16  ;;  %v404_v37 = vmul.u32 %v400_v15, %v376_v57 }
  0xa7   :  { %v405_v39 = vshll.u32 %v402_v21, 16  ;;  %v407_v42 = vshll.u32 %v403_v23, 16  ;;  %v501_v43 = vshrl.u32 %v1734_v45, %v1794_v28  ;;  %v1853_v47 = vor.u32 %v498_v25, %v497_v19 }
  0xa8   :  { %vm387_vm7 = vc.u32 %v379_v31, %v383_v33  ;;  %v389_v41 = vadd.s32 %v383_v33, %v379_v31  ;;  %v386_v49 = vshrl.u32 %v381_v18, 16  ;;  %v503_v54 = vshll.u32 %v1734_v45, %v1790_v24 }
  0xa9   :  { %v388_v44 = vsel %vm387_vm7, 1, %v1728_v0  ;;  %vm409_vm8 = vc.u32 %v401_v34, %v405_v39  ;;  %v411_v46 = vadd.s32 %v405_v39, %v401_v34  ;;  %v1856_v48 = vor.u32 %v501_v43, %v500_v27 }
  0xaa   :  { %v390_v40 = vadd.s32 %v388_v44, %v382_v32  ;;  %vm391_vm9 = vc.u32 %v389_v41, %v385_v36  ;;  %v410_v29 = vsel %vm409_vm8, 1, %v1728_v0  ;;  %v504_v56 = vshrl.u32 %v1729_v26, %v1794_v28 }
  0xab   :  { %v392_v50 = vsel %vm391_vm9, 1, %v1728_v0  ;;  %v412_v51 = vadd.s32 %v410_v29, %v404_v37  ;;  %vm413_vm10 = vc.u32 %v411_v46, %v407_v42  ;;  %v406_v57 = vshrl.u32 %v402_v21, 16 }
  0xac   :  { %v394_v52 = vadd.s32 %v392_v50, %v390_v40  ;;  %v414_v53 = vsel %vm413_vm10, 1, %v1728_v0  ;;  %vm512_vm11 = vcmp.lt.s32.totalorder %v1813_v55, 1  ;;  %vm514_vm12 = vcmp.lt.s32.totalorder %v1813_v55, 3 }
  0xad   :  { %v416_v59 = vadd.s32 %v414_v53, %v412_v51  ;;  %v505_v62 = vor.u32 %v504_v56, %v503_v54  ;;  %v520_v63 = vsel %vm512_vm11, %v1853_v47, %v1856_v48  ;;  %v526_v24 = vsel %vm514_vm12, %v1817_v58, %v525_v13 }
  0xae   :  { %v395_v61 = vadd.s32 %v394_v52, %v384_v35  ;;  %v408_v26 = vshrl.u32 %v403_v23, 16  ;;  %v1875_v45 = vadd.s32 %v411_v46, %v407_v42  ;;  %vm513_vm13 = vcmp.lt.s32.totalorder %v1813_v55, 2 }
  0xaf   :  { %v1866_v60 = vpop.f32.mrf.mxu0  ;;  %v417_v3 = vadd.s32 %v416_v59, %v406_v57  ;;  %v522_v5 = vsel %vm514_vm12, %v505_v62, %v521_v12  ;;  %v524_v6 = vsel %vm512_vm11, %v1856_v48, %v505_v62  ;;  %v365_v9 = vsel %vm359_vm5, %v362_v14, %v364_v16 }
  0xb0   :  { %v1877_v4 = vadd.s32 %v395_v61, %v386_v49  ;;  %v523_v58 = vsel %vm513_vm13, %v520_v63, %v522_v5  ;;  %v527_v11 = vsel %vm513_vm13, %v524_v6, %v526_v24  ;;  %v529_v13 = vand.u32 65535, %v1797_v30  ;;  %v1918_v55 = vpop.f32.mrf.mxu1 }
  0xb1   :  { %v418_v10 = vadd.s32 %v417_v3, %v408_v26  ;;  %v530_v12 = vshrl.u32 %v1797_v30, 16  ;;  %v531_v15 = vand.u32 65535, %v527_v11  ;;  %v532_v18 = vshrl.u32 %v527_v11, 16 }
  0xb2   :  { %vm421_vm14 = vc.u32 %v1877_v4, %v1875_v45  ;;  %v553_v19 = vand.u32 65535, %v523_v58  ;;  %v554_v22 = vshrl.u32 %v523_v58, 16  ;;  %v419_v14 = vmul.u32 %v1786_v20, %v365_v9 }
  0xb3   :  { %v422_v17 = vadd.s32 1, %v418_v10  ;;  %v534_v21 = vmul.u32 %v532_v18, %v529_v13  ;;  %v535_v23 = vmul.u32 %v531_v15, %v530_v12  ;;  %v533_v32 = vmul.u32 %v531_v15, %v529_v13 }
  0xb4   :  { %v556_v27 = vmul.u32 %v554_v22, %v529_v13  ;;  %v557_v34 = vmul.u32 %v553_v19, %v530_v12  ;;  %v536_v36 = vmul.u32 %v532_v18, %v530_v12  ;;  %v555_v37 = vmul.u32 %v553_v19, %v529_v13 }
  0xb5   :  { %v423_v16 = vsel %vm421_vm14, %v422_v17, %v418_v10  ;;  %v537_v33 = vshll.u32 %v534_v21, 16  ;;  %v539_v41 = vshll.u32 %v535_v23, 16  ;;  %v558_v43 = vmul.u32 %v554_v22, %v530_v12 }
  0xb6   :  { %v424_v25 = vadd.s32 %v423_v16, %v419_v14  ;;  %v559_v39 = vshll.u32 %v556_v27, 16  ;;  %v561_v29 = vshll.u32 %v557_v34, 16  ;;  %v538_v53 = vshrl.u32 %v534_v21, 16 }
  0xb7   :  { %v163_v31 = vpop.f32.mrf.mxu0  ;;  %vm541_vm15 = vc.u32 %v533_v32, %v537_v33  ;;  %v543_v42 = vadd.s32 %v537_v33, %v533_v32  ;;  %v496_v57 = vshrl.u32 %v1732_v38, %v1794_v28  ;;  %v517_v59 = vsel %vm515_vm6, %v505_v62, 2102212464 }
  0xb8   :  { %v425_v35 = vadd.s32 536870912, %v424_v25  ;;  %v542_v20 = vsel %vm541_vm15, 1, %v1728_v0  ;;  %vm563_vm0 = vc.u32 %v555_v37, %v559_v39  ;;  %v565_v46 = vadd.s32 %v559_v39, %v555_v37  ;;  %v176_v37 = vpop.f32.mrf.mxu1 }
  0xb9   :  { %v544_v40 = vadd.s32 %v542_v20, %v536_v36  ;;  %vm545_vm1 = vc.u32 %v543_v42, %v539_v41  ;;  %v564_v49 = vsel %vm563_vm0, 1, %v1728_v0  ;;  %v540_v63 = vshrl.u32 %v535_v23, 16 }
  0xba   :  { %v1896_v44 = vshrl.u32 %v425_v35, 30  ;;  %v546_v51 = vsel %vm545_vm1, 1, %v1728_v0  ;;  %v566_v52 = vadd.s32 %v564_v49, %v558_v43  ;;  %vm567_vm2 = vc.u32 %v565_v46, %v561_v29 }
  0xbb   :  { %v548_v54 = vadd.s32 %v546_v51, %v544_v40  ;;  %v568_v61 = vsel %vm567_vm2, 1, %v1728_v0  ;;  %v560_v26 = vshrl.u32 %v556_v27, 16  ;;  %v516_v6 = vsel %vm512_vm11, %v496_v57, %v1853_v47  ;;  %v1624_v51 = vld [vmem:[#allocation6 + $0xd8] sm:$0xff] }
  0xbc   :  { %v427_v50 = vshll.u32 %v1896_v44, 30  ;;  %v570_v3 = vadd.s32 %v568_v61, %v566_v52  ;;  %v518_v9 = vsel %vm514_vm12, %v1856_v48, %v517_v59  ;;  %v562_v38 = vshrl.u32 %v557_v34, 16  ;;  %v1600_v52 = vld [vmem:[#allocation6 + $0x18] sm:$0xff]  ;;  %1141 = vmatpush.bf16.msrb.mxu1 %v1624_v51 }
  0xbd   :  { %v549_v24 = vadd.s32 %v548_v54, %v538_v53  ;;  %v569_v0 = vadd.s32 %v565_v46, %v561_v29  ;;  %v519_v13 = vsel %vm513_vm13, %v516_v6, %v518_v9  ;;  %v420_v48 = vadd.s32 %v1875_v45, %v1877_v4  ;;  %v1608_v57 = vld [vmem:[#allocation6 + $0x58] sm:$0xff]  ;;  %1250 = vmatpush.bf16.msrb.mxu2 %v1600_v52 }
  0xbe   :  { %v428_v56 = vsub.s32 %v424_v25, %v427_v50  ;;  %v571_v10 = vadd.s32 %v570_v3, %v560_v26  ;;  %v573_v47 = vmul.u32 %v1797_v30, %v519_v13  ;;  %vm328_vm7 = vcmp.lt.s32.totalorder %v1774_v1, 0  ;;  %v1616_v50 = vld [vmem:[#allocation6 + $0x98] sm:$0xff]  ;;  %v1941_v26 = vpop.f32.mrf.mxu3  ;;  %1263 = vmatpush.bf16.msrb.mxu3 %v1608_v57 }
  0xbf   :  { %v550_v28 = vadd.s32 %v549_v24, %v540_v63  ;;  %vm1926_vm8 = vcmp.le.f32.partialorder %v326_v7, 0.7853982  ;;  %v450_v46 = vsub.s32 4, %v1896_v44  ;;  %v1939_v24 = vpop.f32.mrf.mxu2  ;;  %1128 = vmatpush.bf16.msrb.mxu0 %v1616_v50  ;;  %vm482_vm10 = vcmp.lt.s32.totalorder %v1776_v2, 0 }
  0xc0   :  { %vm429_vm3 = vcmp.lt.s32.totalorder %v428_v56, 0  ;;  %v430_v5 = vsub.s32 0, %v428_v56  ;;  %v572_v11 = vadd.s32 %v571_v10, %v562_v38  ;;  %v1615_v10 = vld [vmem:[#allocation6 + $0x90] sm:$0xff]  ;;  %vm1949_vm13 = vcmp.le.f32.partialorder %v480_v8, 0.7853982 }
  0xc1   :  { %vm575_vm4 = vc.u32 %v550_v28, %v569_v0  ;;  %v451_v7 = vsel %vm328_vm7, %v450_v46, %v1896_v44  ;;  %v574_v59 = vadd.s32 %v569_v0, %v550_v28  ;;  %v1623_v28 = vld [vmem:[#allocation6 + $0xd0] sm:$0xff]  ;;  %vm469_vm2 = vweird.f32 %v1774_v1 }
  0xc2   :  { %v431_v62 = vsel %vm429_vm3, %v430_v5, %v428_v56  ;;  %v576_v15 = vadd.s32 1, %v572_v11  ;;  %v453_v44 = vsel %vm1926_vm8, 0, %v451_v7  ;;  %1142 = vmatpush.bf16.msrb.mxu1 %v1623_v28 }
  0xc3   :  { %v432_v58 = vclz %v431_v62  ;;  %v1599_v62 = vld [vmem:[#allocation6 + $0x10] sm:$0xff]  ;;  %1129 = vmatpush.bf16.msrb.mxu0 %v1615_v10 }
  0xc4   :  { %v577_v18 = vsel %vm575_vm4, %v576_v15, %v572_v11  ;;  %v1607_v11 = vld [vmem:[#allocation6 + $0x50] sm:$0xff]  ;;  %1251 = vmatpush.bf16.msrb.mxu2 %v1599_v62 }
  0xc5   :  { %v1426_v12 = vadd.s32 4294967294, %v432_v58  ;;  %v578_v14 = vadd.s32 %v577_v18, %v573_v47  ;;  %1264 = vmatpush.bf16.msrb.mxu3 %v1607_v11 }
  0xc7   :  { %vm1427_vm5 = vcmp.lt.s32.totalorder %v1426_v12, 0  ;;  %v579_v25 = vadd.s32 536870912, %v578_v14 }
  0xc8   :  { %v435_v17 = vsel %vm1427_vm5, 0, %v1426_v12 }
  0xc9   :  { %v436_v19 = vsub.s32 32, %v435_v17  ;;  %v440_v22 = vsub.s32 4294967266, %v435_v17  ;;  %v437_v16 = vshll.u32 %v428_v56, %v435_v17  ;;  %v1920_v32 = vshrl.u32 %v579_v25, 30 }
  0xca   :  { %v778_v17 = vadd.s32 3, %v453_v44 }
  0xcb   :  { %v438_v21 = vshrl.u32 %v420_v48, %v436_v19  ;;  %v441_v23 = vadd.s32 127, %v440_v22  ;;  %v581_v30 = vshll.u32 %v1920_v32, 30  ;;  %v1614_v48 = vld [vmem:[#allocation6 + $0x88] sm:$0xff] }
  0xcc   :  { %v1622_v19 = vld [vmem:[#allocation6 + $0xc8] sm:$0xff]  ;;  %1130 = vmatpush.bf16.msrb.mxu0 %v1614_v48 }
  0xcd   :  { %v439_v27 = vor.u32 %v438_v21, %v437_v16  ;;  %v442_v31 = vshll.u32 %v441_v23, 23  ;;  %v582_v36 = vsub.s32 %v578_v14, %v581_v30  ;;  %v1598_v22 = vld [vmem:[#allocation6 + $0x8] sm:$0xff]  ;;  %v470_v23 = vand.u32 3, %v453_v44  ;;  %1143 = vmatpush.bf16.msrb.mxu1 %v1622_v19 }
  0xce   :  { %v1606_v21 = vld [vmem:[#allocation6 + $0x48] sm:$0xff]  ;;  %1252 = vmatpush.bf16.msrb.mxu2 %v1598_v22 }
  0xcf   :  { %v443_v33 = vor.u32 4788187, %v442_v31  ;;  %v446_v35 = vcvt.s32.f32 %v439_v27  ;;  %vm583_vm6 = vcmp.lt.s32.totalorder %v582_v36, 0  ;;  %v584_v4 = vsub.s32 0, %v582_v36  ;;  %v286_v31 = vpop.f32.mrf.mxu2  ;;  %1265 = vmatpush.bf16.msrb.mxu3 %v1606_v21 }
  0xd0   :  { %vm471_vm11 = vcmp.lt.s32.totalorder %v470_v23, 2  ;;  %vm472_vm12 = vcmp.eq.s32.totalorder %v470_v23, 0  ;;  %vm475_vm14 = vcmp.eq.s32.totalorder %v470_v23, 2 }
  0xd1   :  { %v444_v34 = vand.u32 2147483647, %v443_v33  ;;  %v585_v41 = vsel %vm583_vm6, %v584_v4, %v582_v36  ;;  %v299_v33 = vpop.f32.mrf.mxu3  ;;  %v1597_v4 = vld [vmem:[#allocation6] sm:$0xff] }
  0xd2   :  { %v586_v42 = vclz %v585_v41  ;;  %1253 = vmatpush.bf16.msrb.mxu2 %v1597_v4 }
  0xd3   :  { %v447_v45 = vmul.f32 %v446_v35, %v444_v34  ;;  %v779_v35 = vand.u32 3, %v778_v17 }
  0xd4   :  { %v1429_v29 = vadd.s32 4294967294, %v586_v42 }
  0xd5   :  { %v448_v39 = vxor.u32 2147483648, %v447_v45  ;;  %vm780_vm15 = vcmp.lt.s32.totalorder %v779_v35, 2  ;;  %vm781_vm0 = vcmp.eq.s32.totalorder %v779_v35, 0  ;;  %vm784_vm1 = vcmp.eq.s32.totalorder %v779_v35, 2 }
  0xd6   :  { %vm1430_vm9 = vcmp.lt.s32.totalorder %v1429_v29, 0 }
  0xd7   :  { %v449_v20 = vsel %vm328_vm7, %v448_v39, %v447_v45  ;;  %v589_v56 = vsel %vm1430_vm9, 0, %v1429_v29  ;;  %v1621_v45 = vld [vmem:[#allocation6 + $0xc0] sm:$0xff]  ;;  %vm623_vm9 = vweird.f32 %v1776_v2 }
  0xd8   :  { %v1934_v40 = vsel %vm1926_vm8, %v1774_v1, %v449_v20  ;;  %v590_v61 = vsub.s32 32, %v589_v56  ;;  %v594_v63 = vsub.s32 4294967266, %v589_v56  ;;  %v591_v6 = vshll.u32 %v582_v36, %v589_v56  ;;  %v1613_v36 = vld [vmem:[#allocation6 + $0x80] sm:$0xff]  ;;  %1144 = vmatpush.bf16.msrb.mxu1 %v1621_v45 }
  0xd9   :  { %v454_v49 = vmul.f32 %v1934_v40, %v1934_v40  ;;  %v1605_v39 = vld [vmem:[#allocation6 + $0x40] sm:$0xff]  ;;  %1131 = vmatpush.bf16.msrb.mxu0 %v1613_v36 }
  0xda   :  { %v592_v9 = vshrl.u32 %v574_v59, %v590_v61  ;;  %v595_v38 = vadd.s32 127, %v594_v63  ;;  %1266 = vmatpush.bf16.msrb.mxu3 %v1605_v39 }
  0xdb   :  { %v455_v53 = vmul.f32 -0.001358992, %v454_v49  ;;  %v462_v54 = vmul.f32 -0.00019511016, %v454_v49 }
  0xdc   :  { %v593_v13 = vor.u32 %v592_v9, %v591_v6  ;;  %v596_v12 = vshll.u32 %v595_v38, 23 }
  0xdd   :  { %v456_v3 = vadd.f32 0.041655596, %v455_v53  ;;  %v463_v5 = vadd.f32 0.008332121, %v462_v54 }
  0xde   :  { %v597_v18 = vor.u32 4788187, %v596_v12  ;;  %v600_v27 = vcvt.s32.f32 %v593_v13 }
  0xdf   :  { %v457_v58 = vmul.f32 %v456_v3, %v454_v49  ;;  %v464_v0 = vmul.f32 %v463_v5, %v454_v49 }
  0xe0   :  { %v598_v25 = vand.u32 2147483647, %v597_v18 }
  0xe1   :  { %v458_v15 = vadd.f32 -0.4999988, %v457_v58  ;;  %v465_v47 = vadd.f32 -0.16666654, %v464_v0 }
  0xe2   :  { %v601_v37 = vmul.f32 %v600_v27, %v598_v25 }
  0xe3   :  { %v459_v14 = vmul.f32 %v458_v15, %v454_v49  ;;  %v466_v16 = vmul.f32 %v465_v47, %v454_v49  ;;  %v604_v49 = vsub.s32 4, %v1920_v32 }
  0xe4   :  { %v602_v20 = vxor.u32 2147483648, %v601_v37 }
  0xe5   :  { %v460_v30 = vadd.f32 1.0, %v459_v14  ;;  %v467_v34 = vadd.f32 1.0, %v466_v16  ;;  %v605_v61 = vsel %vm482_vm10, %v604_v49, %v1920_v32 }
  0xe6   :  { %v603_v29 = vsel %vm482_vm10, %v602_v20, %v601_v37  ;;  %v607_v10 = vsel %vm1949_vm13, 0, %v605_v61 }
  0xe7   :  { %v468_v41 = vmul.f32 %v467_v34, %v1934_v40  ;;  %v476_v42 = vxor.u32 2147483648, %v460_v30  ;;  %v606_v52 = vsel %vm1949_vm13, %v1776_v2, %v603_v29  ;;  %v933_v15 = vadd.s32 3, %v607_v10 }
  0xe8   :  { %v608_v54 = vmul.f32 %v606_v52, %v606_v52  ;;  %v624_v48 = vand.u32 3, %v607_v10 }
  0xe9   :  { %v473_v46 = vxor.u32 2147483648, %v468_v41  ;;  %v477_v40 = vsel %vm475_vm14, %v476_v42, %v468_v41  ;;  %v786_v51 = vsel %vm784_vm1, %v476_v42, %v468_v41 }
  0xea   :  { %v609_v63 = vmul.f32 -0.001358992, %v608_v54  ;;  %v616_v3 = vmul.f32 -0.00019511016, %v608_v54  ;;  %vm625_vm3 = vcmp.lt.s32.totalorder %v624_v48, 2  ;;  %vm626_vm4 = vcmp.eq.s32.totalorder %v624_v48, 0 }
  0xeb   :  { %v474_v8 = vsel %vm472_vm12, %v460_v30, %v473_v46  ;;  %v783_v50 = vsel %vm781_vm0, %v460_v30, %v473_v46  ;;  %vm629_vm5 = vcmp.eq.s32.totalorder %v624_v48, 2 }
  0xec   :  { %v478_v7 = vsel %vm471_vm11, %v474_v8, %v477_v40  ;;  %v787_v53 = vsel %vm780_vm15, %v783_v50, %v786_v51  ;;  %v610_v1 = vadd.f32 0.041655596, %v609_v63  ;;  %v617_v9 = vadd.f32 0.008332121, %v616_v3 }
  0xed   :  { %v479_v56 = vsel %vm469_vm2, nan, %v478_v7  ;;  %v788_v57 = vsel %vm469_vm2, nan, %v787_v53 }
  0xee   :  { %v944_v59 = vsub.f32 0.0, %v788_v57  ;;  %v946_v5 = vmul.f32 %v479_v56, %v1866_v60  ;;  %v956_v44 = vmul.f32 %v479_v56, %v1939_v24  ;;  %v611_v28 = vmul.f32 %v610_v1, %v608_v54 }
  0xef   :  { %v618_v62 = vmul.f32 %v617_v9, %v608_v54 }
  0xf0   :  { %v954_v6 = vmul.f32 %v944_v59, %v1866_v60  ;;  %v948_v38 = vmul.f32 %v944_v59, %v1939_v24  ;;  %v612_v32 = vadd.f32 -0.4999988, %v611_v28  ;;  %v934_v24 = vand.u32 3, %v933_v15 }
  0xf1   :  { %v619_v11 = vadd.f32 -0.16666654, %v618_v62 }
  0xf2   :  { %v950_v58 = vsub.f32 %v946_v5, %v948_v38  ;;  %v958_v0 = vadd.f32 %v956_v44, %v954_v6  ;;  %v613_v47 = vmul.f32 %v612_v32, %v608_v54  ;;  %vm935_vm6 = vcmp.lt.s32.totalorder %v934_v24, 2 }
  0xf3   :  { %v620_v17 = vmul.f32 %v619_v11, %v608_v54  ;;  %vm936_vm7 = vcmp.eq.s32.totalorder %v934_v24, 0  ;;  %vm939_vm8 = vcmp.eq.s32.totalorder %v934_v24, 2 }
  0xf4   :  { %v960_v13 = vpack.c.bf16 %v958_v0, %v958_v0  ;;  %v952_v12 = vpack.c.bf16 %v950_v58, %v950_v58  ;;  %v614_v60 = vadd.f32 1.0, %v613_v47 }
  0xf5   :  { %v621_v18 = vadd.f32 1.0, %v620_v17 }
  0xf6   :  { %1132 = vmatmul.bf16.vlgmr.msrb.gmra.mxu0 %v960_v13  ;;  %1254 = vmatmul.bf16.vlgmr.msrb.gmra.mxu2 %v952_v12  ;;  %v630_v22 = vxor.u32 2147483648, %v614_v60 }
  0xf7   :  { %v622_v19 = vmul.f32 %v621_v18, %v606_v52 }
  0xf9   :  { %v627_v14 = vxor.u32 2147483648, %v622_v19  ;;  %v631_v21 = vsel %vm629_vm5, %v630_v22, %v622_v19  ;;  %v941_v25 = vsel %vm939_vm8, %v630_v22, %v622_v19 }
  0xfb   :  { %v628_v16 = vsel %vm626_vm4, %v614_v60, %v627_v14  ;;  %v938_v23 = vsel %vm936_vm7, %v614_v60, %v627_v14 }
  0xfc   :  { %v632_v27 = vsel %vm625_vm3, %v628_v16, %v631_v21  ;;  %v942_v31 = vsel %vm935_vm6, %v938_v23, %v941_v25 }
  0xfd   :  { %v633_v33 = vsel %vm623_vm9, nan, %v632_v27  ;;  %v943_v30 = vsel %vm623_vm9, nan, %v942_v31 }
  0xfe   :  { %v945_v34 = vsub.f32 0.0, %v943_v30  ;;  %v947_v35 = vmul.f32 %v633_v33, %v1918_v55  ;;  %v957_v4 = vmul.f32 %v633_v33, %v1941_v26 }
 0x100   :  { %v955_v36 = vmul.f32 %v945_v34, %v1918_v55  ;;  %v949_v45 = vmul.f32 %v945_v34, %v1941_v26 }
 0x102   :  { %v951_v37 = vsub.f32 %v947_v35, %v949_v45  ;;  %v959_v39 = vadd.f32 %v957_v4, %v955_v36 }
 0x104   :  { %v961_v41 = vpack.c.bf16 %v959_v39, %v959_v39  ;;  %v953_v42 = vpack.c.bf16 %v951_v37, %v951_v37 }
 0x106   :  { %1145 = vmatmul.bf16.vlgmr.msrb.gmra.mxu1 %v961_v41  ;;  %1267 = vmatmul.bf16.vlgmr.msrb.gmra.mxu3 %v953_v42 }
 0x173   :  { %v1133_v2 = vpop.f32.mrf.mxu0 }
 0x179   :  { %v1255_v43 = vpop.f32.mrf.mxu2 }
 0x17b   :  { %v1135_v20 = vpop.f32.mrf.mxu0 }
 0x181   :  { %v1257_v46 = vpop.f32.mrf.mxu2 }
 0x183   :  { %v1146_v40 = vpop.f32.mrf.mxu1 }
 0x184   :  { %v1147_v29 = vadd.f32 %v1146_v40, %v1133_v2 }
 0x186   :  { %v1256_v49 = vadd.f32 %v1255_v43, %v1147_v29 }
 0x189   :  { %v1268_v55 = vpop.f32.mrf.mxu3 }
 0x18a   :  { %v1269_v26 = vadd.f32 %v1268_v55, %v1256_v49 }
 0x18b   :  { %v1148_v8 = vpop.f32.mrf.mxu1 }
 0x18c   :  { %1278 = vst [vmem:[#allocation8] sm:$0xff] %v1269_v26 }
 0x18d   :  { %1289 = dma.vmem_to_hbm [thread:$0]  %s1285_s30, 128, %s1287_s7, [#allocation5]  }
 0x191   :  { %v1270_v50 = vpop.f32.mrf.mxu3 }
 0x192   :  { %1720 = dma.done.wait [#allocation5], 128  }
 0x193   :  { %1721 = vsyncadd [#allocation5], 4294967168 }
 0x194   :  { %1294 = vsyncpa [#allocation4], 1 }
 0x195   :  { %1295 = vsyncpa [#allocation7], 1 }
 0x196   :  { %1296 = vsyncpa [#allocation5], 1 }

// kernel: tpu_custom_call.1
= control target key start
LH: loop header
LB: loop body
LE: loop exit
PB: predicated region body
PF: predicated region fallthrough
CT: control target
= control target key end

     0   :  { %9 = vsyncpa [#allocation4], 0  ;;  %s1978_s0 = inlined_call_operand.vmem [shape: f32[1,8,1], index: 0, kind: input, shape index: {}]   ;;  %s1979_s1 = inlined_call_operand.vmem [shape: bf16[1,8,128], index: 1, kind: input, shape index: {}]   ;;  %s1980_s2 = inlined_call_operand.hbm [shape: bf16[2,128,256], index: 2, kind: input, shape index: {}]   ;;  %s1981_s3 = inlined_call_operand.hbm [shape: bf16[2,256,128], index: 3, kind: input, shape index: {}]   ;;  %s1982_s4 = inlined_call_operand.hbm [shape: f32[1,8,128], index: 4, kind: output, shape index: {}]  }
   0x1   :  { %10 = vsyncpa [#allocation7], 0 }
   0x2   :  { %11 = vsyncpa [#allocation5], 0  ;;  %s20_s17 = sshll.u32 %s1980_s2, 4  ;;  %s1722_s18 = smov [#allocation3]   ;;  %s21_s17 = int_to_ptr.hbm [resolvable:$true] %s20_s17 }
   0x3   :  { %s22_s19 = sshll.u32 %s1722_s18, 4  ;;  %s33_s22 = sshll.u32 %s1981_s3, 4  ;;  %s23_s19 = int_to_ptr.vmem [resolvable:$true] %s22_s19  ;;  %s34_s22 = int_to_ptr.hbm [resolvable:$true] %s33_s22 }
   0x4   :  { %s1723_s23 = smov 128   ;;  %s1724_s24 = smov 8  }
   0x5   :  { %28 = dma.hbm_to_vmem [thread:$0]  %s21_s17, 4096, %s23_s19, [#allocation4], %s1723_s23, %s1723_s23, %s1724_s24  }
   0x6   :  { %s1725_s25 = smov [#allocation6]   ;;  %s1726_s27 = smov 64  }
   0x7   :  { %s35_s26 = sshll.u32 %s1725_s25, 4  ;;  %s1727_s28 = smov 4   ;;  %s36_s26 = int_to_ptr.vmem [resolvable:$true] %s35_s26 }
   0x8   :  { %41 = dma.hbm_to_vmem [thread:$0]  %s34_s22, 4096, %s36_s26, [#allocation7], %s1726_s27, %s1726_s27, %s1727_s28  }
   0x9   :  { %1716 = dma.done.wait [#allocation4], 4096  }
   0xa   :  { %1717 = vsyncadd [#allocation4], 4294963200 }
   0xb   :  { %1718 = dma.done.wait [#allocation7], 4096  }
   0xc   :  { %1719 = vsyncadd [#allocation7], 4294963200  ;;  %v1728_v0 = vmov 0   ;;  %v301_v1 = vld [vmem:[%s1978_s0] sm:$0xff]  ;;  %v1419_v2 = vld [vmem:[#allocation3 + $0xf0] sm:$0xf] }
   0xd   :  { %1643 = vset.pattern.permute.xlu0 %v1728_v0  ;;  %v1596_v3 = vld [vmem:[#allocation3 + $0xf4] sm:$0xf0]  ;;  %v302_v4 = vmul.f32 42.666668, %v301_v1  ;;  %v1595_v6 = vld [vmem:[#allocation3 + $0xf4] sm:$0xf] }
   0xe   :  { %v1420_v5 = vor.u32 %v1596_v3, %v1419_v2  ;;  %v1421_v7 = vld [vmem:[#allocation3 + $0xf8] sm:$0xf0]  ;;  %v1411_v9 = vld [vmem:[#allocation3 + $0xe0] sm:$0xf]  ;;  %v1594_v10 = vld [vmem:[#allocation3 + $0xe4] sm:$0xf0] }
   0xf   :  { %v1424_v8 = vor.u32 %v1595_v6, %v1421_v7  ;;  %v1593_v11 = vld [vmem:[#allocation3 + $0xe4] sm:$0xf]  ;;  %v312_v12 = vmul.f32 0.005181347, %v302_v4  ;;  %v1412_v13 = vor.u32 %v1594_v10, %v1411_v9  ;;  %v1413_v14 = vld [vmem:[#allocation3 + $0xe8] sm:$0xf0] }
  0x10   :  { %275 = vmatpush.bf16.msra.mxu2 %v1420_v5  ;;  %v1355_v15 = vld [vmem:[#allocation3 + $0x70] sm:$0xf]  ;;  %v1416_v16 = vor.u32 %v1593_v11, %v1413_v14  ;;  %v1580_v17 = vld [vmem:[#allocation3 + $0x74] sm:$0xf0]  ;;  %v1579_v18 = vld [vmem:[#allocation3 + $0x74] sm:$0xf] }
  0x11   :  { %288 = vmatpush.bf16.msra.mxu3 %v1424_v8  ;;  %v1357_v19 = vld [vmem:[#allocation3 + $0x78] sm:$0xf0]  ;;  %315 = vperm.xlu0 %1643, %v312_v12   ;;  %v1356_v20 = vor.u32 %v1580_v17, %v1355_v15  ;;  %v1403_v22 = vld [vmem:[#allocation3 + $0xd0] sm:$0xf]  ;;  %v1592_v23 = vld [vmem:[#allocation3 + $0xd4] sm:$0xf0] }
  0x12   :  { %v1360_v21 = vor.u32 %v1579_v18, %v1357_v19  ;;  %v1591_v24 = vld [vmem:[#allocation3 + $0xd4] sm:$0xf]  ;;  %v1405_v25 = vld [vmem:[#allocation3 + $0xd8] sm:$0xf0]  ;;  %v1347_v26 = vld [vmem:[#allocation3 + $0x60] sm:$0xf]  ;;  %v1404_v28 = vor.u32 %v1592_v23, %v1403_v22 }
  0x13   :  { %v1578_v27 = vld [vmem:[#allocation3 + $0x64] sm:$0xf0]  ;;  %152 = vmatpush.bf16.msra.mxu0 %v1356_v20  ;;  %v1577_v30 = vld [vmem:[#allocation3 + $0x64] sm:$0xf]  ;;  %v1349_v31 = vld [vmem:[#allocation3 + $0x68] sm:$0xf0]  ;;  %v1408_v33 = vor.u32 %v1591_v24, %v1405_v25 }
  0x14   :  { %276 = vmatpush.bf16.msra.mxu2 %v1412_v13  ;;  %v1348_v29 = vor.u32 %v1578_v27, %v1347_v26  ;;  %v1395_v32 = vld [vmem:[#allocation3 + $0xc0] sm:$0xf]  ;;  %165 = vmatpush.bf16.msra.mxu1 %v1360_v21  ;;  %v1352_v34 = vor.u32 %v1577_v30, %v1349_v31  ;;  %v1590_v35 = vld [vmem:[#allocation3 + $0xc4] sm:$0xf0]  ;;  %v1589_v36 = vld [vmem:[#allocation3 + $0xc4] sm:$0xf] }
  0x15   :  { %289 = vmatpush.bf16.msra.mxu3 %v1416_v16  ;;  %v1397_v37 = vld [vmem:[#allocation3 + $0xc8] sm:$0xf0]  ;;  %v1339_v38 = vld [vmem:[#allocation3 + $0x50] sm:$0xf]  ;;  %v1576_v39 = vld [vmem:[#allocation3 + $0x54] sm:$0xf0]  ;;  %v1396_v42 = vor.u32 %v1590_v35, %v1395_v32 }
  0x16   :  { %v1575_v40 = vld [vmem:[#allocation3 + $0x54] sm:$0xf]  ;;  %v1341_v41 = vld [vmem:[#allocation3 + $0x58] sm:$0xf0]  ;;  %v1340_v43 = vor.u32 %v1576_v39, %v1339_v38  ;;  %v1387_v44 = vld [vmem:[#allocation3 + $0xb0] sm:$0xf]  ;;  %v1400_v46 = vor.u32 %v1589_v36, %v1397_v37  ;;  %v304_v38 = vlaneseq }
  0x17   :  { %153 = vmatpush.bf16.msra.mxu0 %v1348_v29  ;;  %v1588_v45 = vld [vmem:[#allocation3 + $0xb4] sm:$0xf0]  ;;  %v1344_v47 = vor.u32 %v1575_v40, %v1341_v41  ;;  %v1587_v48 = vld [vmem:[#allocation3 + $0xb4] sm:$0xf]  ;;  %v1331_v49 = vld [vmem:[#allocation3 + $0x40] sm:$0xf] }
  0x18   :  { %277 = vmatpush.bf16.msra.mxu2 %v1404_v28  ;;  %166 = vmatpush.bf16.msra.mxu1 %v1352_v34  ;;  %v1574_v50 = vld [vmem:[#allocation3 + $0x44] sm:$0xf0]  ;;  %v1389_v51 = vld [vmem:[#allocation3 + $0xb8] sm:$0xf0]  ;;  %v1573_v52 = vld [vmem:[#allocation3 + $0x44] sm:$0xf]  ;;  %v1388_v54 = vor.u32 %v1588_v45, %v1387_v44 }
  0x19   :  { %290 = vmatpush.bf16.msra.mxu3 %v1408_v33  ;;  %v1333_v53 = vld [vmem:[#allocation3 + $0x48] sm:$0xf0]  ;;  %v1332_v55 = vor.u32 %v1574_v50, %v1331_v49  ;;  %v1379_v56 = vld [vmem:[#allocation3 + $0xa0] sm:$0xf]  ;;  %v1586_v57 = vld [vmem:[#allocation3 + $0xa4] sm:$0xf0]  ;;  %v1392_v58 = vor.u32 %v1587_v48, %v1389_v51 }
  0x1a   :  { %v1336_v59 = vor.u32 %v1573_v52, %v1333_v53  ;;  %v1585_v60 = vld [vmem:[#allocation3 + $0xa4] sm:$0xf]  ;;  %v1323_v61 = vld [vmem:[#allocation3 + $0x30] sm:$0xf]  ;;  %v1572_v62 = vld [vmem:[#allocation3 + $0x34] sm:$0xf0]  ;;  %v1380_v3 = vor.u32 %v1586_v57, %v1379_v56 }
  0x1b   :  { %154 = vmatpush.bf16.msra.mxu0 %v1340_v43  ;;  %v1381_v63 = vld [vmem:[#allocation3 + $0xa8] sm:$0xf0]  ;;  %v1571_v1 = vld [vmem:[#allocation3 + $0x34] sm:$0xf]  ;;  %v1325_v2 = vld [vmem:[#allocation3 + $0x38] sm:$0xf0]  ;;  %v1324_v4 = vor.u32 %v1572_v62, %v1323_v61 }
  0x1c   :  { %278 = vmatpush.bf16.msra.mxu2 %v1396_v42  ;;  %167 = vmatpush.bf16.msra.mxu1 %v1344_v47  ;;  %v1371_v5 = vld [vmem:[#allocation3 + $0x90] sm:$0xf]  ;;  %v1584_v6 = vld [vmem:[#allocation3 + $0x94] sm:$0xf0]  ;;  %v1384_v7 = vor.u32 %v1585_v60, %v1381_v63  ;;  %v1328_v8 = vor.u32 %v1571_v1, %v1325_v2  ;;  %v1583_v9 = vld [vmem:[#allocation3 + $0x94] sm:$0xf] }
  0x1d   :  { %291 = vmatpush.bf16.msra.mxu3 %v1400_v46  ;;  %v1315_v10 = vld [vmem:[#allocation3 + $0x20] sm:$0xf]  ;;  %v1570_v11 = vld [vmem:[#allocation3 + $0x24] sm:$0xf0]  ;;  %v1373_v12 = vld [vmem:[#allocation3 + $0x98] sm:$0xf0]  ;;  %v1372_v15 = vor.u32 %v1584_v6, %v1371_v5 }
  0x1e   :  { %v1569_v13 = vld [vmem:[#allocation3 + $0x24] sm:$0xf]  ;;  %v1317_v14 = vld [vmem:[#allocation3 + $0x28] sm:$0xf0]  ;;  %v1316_v16 = vor.u32 %v1570_v11, %v1315_v10  ;;  %v1363_v17 = vld [vmem:[#allocation3 + $0x80] sm:$0xf]  ;;  %v1376_v19 = vor.u32 %v1583_v9, %v1373_v12 }
  0x1f   :  { %155 = vmatpush.bf16.msra.mxu0 %v1332_v55  ;;  %v1582_v18 = vld [vmem:[#allocation3 + $0x84] sm:$0xf0]  ;;  %v1320_v20 = vor.u32 %v1569_v13, %v1317_v14  ;;  %v1581_v21 = vld [vmem:[#allocation3 + $0x84] sm:$0xf]  ;;  %v1307_v22 = vld [vmem:[#allocation3 + $0x10] sm:$0xf] }
  0x20   :  { %279 = vmatpush.bf16.msra.mxu2 %v1388_v54  ;;  %168 = vmatpush.bf16.msra.mxu1 %v1336_v59  ;;  %v1568_v23 = vld [vmem:[#allocation3 + $0x14] sm:$0xf0]  ;;  %v1365_v24 = vld [vmem:[#allocation3 + $0x88] sm:$0xf0]  ;;  %v1567_v25 = vld [vmem:[#allocation3 + $0x14] sm:$0xf]  ;;  %v1364_v27 = vor.u32 %v1582_v18, %v1363_v17 }
  0x21   :  { %292 = vmatpush.bf16.msra.mxu3 %v1392_v58  ;;  %v1309_v26 = vld [vmem:[#allocation3 + $0x18] sm:$0xf0]  ;;  %v1308_v28 = vor.u32 %v1568_v23, %v1307_v22  ;;  %v1368_v29 = vor.u32 %v1581_v21, %v1365_v24  ;;  %v1299_v31 = vld [vmem:[#allocation3] sm:$0xf]  ;;  %v1566_v32 = vld [vmem:[#allocation3 + $0x4] sm:$0xf0] }
  0x22   :  { %v1312_v30 = vor.u32 %v1567_v25, %v1309_v26  ;;  %v1565_v33 = vld [vmem:[#allocation3 + $0x4] sm:$0xf]  ;;  %v1301_v34 = vld [vmem:[#allocation3 + $0x8] sm:$0xf0]  ;;  %v55_v35 = vld [vmem:[%s1979_s1] sm:$0xf]  ;;  %v1300_v36 = vor.u32 %v1566_v32, %v1299_v31 }
  0x23   :  { %156 = vmatpush.bf16.msra.mxu0 %v1324_v4  ;;  %v1304_v37 = vor.u32 %v1565_v33, %v1301_v34  ;;  %v305_v39 = vand.u32 127, %v304_v38  ;;  %v1620_v41 = vld [vmem:[#allocation6 + $0xb8] sm:$0xff]  ;;  %v1619_v47 = vld [vmem:[#allocation6 + $0xb0] sm:$0xff]  ;;  %v1618_v54 = vld [vmem:[#allocation6 + $0xa8] sm:$0xff]  ;;  %v1729_v26 = vmov 2102212464  }
  0x24   :  { %280 = vmatpush.bf16.msra.mxu2 %v1380_v3  ;;  %169 = vmatpush.bf16.msra.mxu1 %v1328_v8  ;;  %v1628_v42 = vld [vmem:[#allocation6 + $0xf8] sm:$0xff]  ;;  %v1627_v48 = vld [vmem:[#allocation6 + $0xf0] sm:$0xff]  ;;  %v1626_v55 = vld [vmem:[#allocation6 + $0xe8] sm:$0xff]  ;;  %v1730_v31 = vmov 920167782   ;;  %s1735_s1 = smov [#allocation8]  }
  0x25   :  { %293 = vmatpush.bf16.msra.mxu3 %v1384_v7  ;;  %v306_v40 = vadd.s32 128, %v305_v39  ;;  %v1604_v43 = vld [vmem:[#allocation6 + $0x38] sm:$0xff]  ;;  %v310_v44 = vcvt.s32.f32 %v305_v39  ;;  %v1603_v49 = vld [vmem:[#allocation6 + $0x30] sm:$0xff]  ;;  %v1602_v58 = vld [vmem:[#allocation6 + $0x28] sm:$0xff]  ;;  %v1731_v34 = vmov 1326507024  }
  0x26   :  { %v1612_v46 = vld [vmem:[#allocation6 + $0x78] sm:$0xff]  ;;  %v1611_v50 = vld [vmem:[#allocation6 + $0x70] sm:$0xff]  ;;  %v1610_v59 = vld [vmem:[#allocation6 + $0x68] sm:$0xff]  ;;  %v1732_v38 = vmov 683565275   ;;  %s1284_s30 = sshll.u32 %s1735_s1, 4  ;;  %s1285_s30 = int_to_ptr.vmem [resolvable:$true] %s1284_s30 }
  0x27   :  { %157 = vmatpush.bf16.msra.mxu0 %v1316_v16  ;;  %v311_v45 = vcvt.s32.f32 %v306_v40  ;;  %v1617_v62 = vld [vmem:[#allocation6 + $0xa0] sm:$0xff]  ;;  %v1733_v40 = vmov 2475754826   ;;  %s1286_s7 = sshll.u32 %s1982_s4, 4  ;;  %s1287_s7 = int_to_ptr.hbm [resolvable:$true] %s1286_s7 }
  0x28   :  { %281 = vmatpush.bf16.msra.mxu2 %v1372_v15  ;;  %170 = vmatpush.bf16.msra.mxu1 %v1320_v20  ;;  %v1625_v63 = vld [vmem:[#allocation6 + $0xe0] sm:$0xff] }
  0x29   :  { %294 = vmatpush.bf16.msra.mxu3 %v1376_v19  ;;  %v1601_v3 = vld [vmem:[#allocation6 + $0x20] sm:$0xff] }
  0x2a   :  { %v1609_v4 = vld [vmem:[#allocation6 + $0x60] sm:$0xff] }
  0x2b   :  { %158 = vmatpush.bf16.msra.mxu0 %v1308_v28 }
  0x2c   :  { %282 = vmatpush.bf16.msra.mxu2 %v1364_v27  ;;  %171 = vmatpush.bf16.msra.mxu1 %v1312_v30 }
  0x2d   :  { %295 = vmatpush.bf16.msra.mxu3 %v1368_v29 }
  0x2f   :  { %283 = vmatmul.bf16.vlgmr.msra.gmra.mxu2 %v55_v35  ;;  %159 = vmatpush.bf16.msra.mxu0 %v1300_v36 }
  0x30   :  { %296 = vmatmul.bf16.vlgmr.msra.gmra.mxu3 %v55_v35  ;;  %172 = vmatpush.bf16.msra.mxu1 %v1304_v37 }
  0x31   :  { %1246 = vmatpush.bf16.msrb.mxu2 %v1604_v43  ;;  %1259 = vmatpush.bf16.msrb.mxu3 %v1612_v46 }
  0x32   :  { %160 = vmatmul.bf16.vlgmr.msra.gmra.mxu0 %v55_v35 }
  0x33   :  { %173 = vmatmul.bf16.vlgmr.msra.gmra.mxu1 %v55_v35  ;;  %1124 = vmatpush.bf16.msrb.mxu0 %v1620_v41 }
  0x34   :  { %1137 = vmatpush.bf16.msrb.mxu1 %v1628_v42 }
  0x35   :  { %1247 = vmatpush.bf16.msrb.mxu2 %v1603_v49  ;;  %1260 = vmatpush.bf16.msrb.mxu3 %v1611_v50 }
  0x37   :  { %1125 = vmatpush.bf16.msrb.mxu0 %v1619_v47 }
  0x38   :  { %1138 = vmatpush.bf16.msrb.mxu1 %v1627_v48 }
  0x39   :  { %1248 = vmatpush.bf16.msrb.mxu2 %v1602_v58  ;;  %1261 = vmatpush.bf16.msrb.mxu3 %v1610_v59 }
  0x3b   :  { %1126 = vmatpush.bf16.msrb.mxu0 %v1618_v54 }
  0x3c   :  { %1139 = vmatpush.bf16.msrb.mxu1 %v1626_v55 }
  0x3d   :  { %1249 = vmatpush.bf16.msrb.mxu2 %v1601_v3  ;;  %1262 = vmatpush.bf16.msrb.mxu3 %v1609_v4 }
  0x3f   :  { %1127 = vmatpush.bf16.msrb.mxu0 %v1617_v62 }
  0x40   :  { %1140 = vmatpush.bf16.msrb.mxu1 %v1625_v63 }
  0x83   :  { %v316_v51 = vpop.permute.xlu0 %315 }
  0x84   :  { %v318_v52 = vmul.f32 %v316_v51, %v310_v44  ;;  %v319_v53 = vmul.f32 %v316_v51, %v311_v45  ;;  %v1734_v45 = vmov 2131351028  }
  0x86   :  { %v320_v56 = vfloor.f32 %v318_v52  ;;  %v321_v57 = vfloor.f32 %v319_v53 }
  0x88   :  { %v322_v60 = vsub.f32 %v318_v52, %v320_v56  ;;  %v323_v61 = vsub.f32 %v319_v53, %v321_v57 }
  0x8a   :  { %v1774_v1 = vmul.f32 6.2831855, %v322_v60  ;;  %v1776_v2 = vmul.f32 6.2831855, %v323_v61 }
  0x8c   :  { %v329_v5 = vand.u32 2139095040, %v1774_v1  ;;  %v483_v6 = vand.u32 2139095040, %v1776_v2  ;;  %v326_v7 = vand.u32 2147483647, %v1774_v1  ;;  %v480_v8 = vand.u32 2147483647, %v1776_v2 }
  0x8e   :  { %v330_v9 = vshrl.u32 %v329_v5, 23  ;;  %v484_v10 = vshrl.u32 %v483_v6, 23  ;;  %v333_v11 = vand.u32 8388607, %v326_v7  ;;  %v487_v15 = vand.u32 8388607, %v480_v8 }
  0x90   :  { %v1425_v12 = vadd.s32 4294967169, %v330_v9  ;;  %v1428_v13 = vadd.s32 4294967169, %v484_v10  ;;  %v334_v14 = vor.u32 8388608, %v333_v11  ;;  %v488_v21 = vor.u32 8388608, %v487_v15 }
  0x92   :  { %v336_v16 = vadd.s32 1, %v1425_v12  ;;  %v490_v17 = vadd.s32 1, %v1428_v13  ;;  %v1786_v20 = vshll.u32 %v334_v14, 8  ;;  %v1797_v30 = vshll.u32 %v488_v21, 8 }
  0x94   :  { %vm337_vm0 = vcmp.gt.s32.totalorder %v336_v16, 0  ;;  %vm491_vm1 = vcmp.gt.s32.totalorder %v490_v17, 0  ;;  %v375_v29 = vand.u32 65535, %v1786_v20  ;;  %v376_v57 = vshrl.u32 %v1786_v20, 16 }
  0x95   :  { %v338_v18 = vsel %vm337_vm0, %v336_v16, 0  ;;  %v492_v19 = vsel %vm491_vm1, %v490_v17, 0 }
  0x96   :  { %v1788_v22 = vshrl.u32 %v338_v18, 5  ;;  %v340_v23 = vand.u32 31, %v338_v18  ;;  %v1790_v24 = vand.u32 31, %v492_v19  ;;  %v1813_v55 = vshrl.u32 %v492_v19, 5 }
  0x98   :  { %v341_v25 = vsub.s32 32, %v340_v23  ;;  %v352_v27 = vshll.u32 %v1729_v26, %v340_v23  ;;  %v1794_v28 = vsub.s32 32, %v1790_v24  ;;  %v355_v33 = vshll.u32 %v1730_v31, %v340_v23 }
  0x99   :  { %vm361_vm2 = vcmp.lt.s32.totalorder %v1788_v22, 4  ;;  %v343_v39 = vshll.u32 %v1732_v38, %v340_v23  ;;  %v346_v44 = vshll.u32 %v1733_v40, %v340_v23  ;;  %v506_v47 = vshll.u32 %v1729_v26, %v1790_v24 }
  0x9a   :  { %v353_v32 = vshrl.u32 %v1730_v31, %v341_v25  ;;  %v356_v35 = vshrl.u32 %v1731_v34, %v341_v25  ;;  %v507_v36 = vshrl.u32 %v1730_v31, %v1794_v28  ;;  %v510_v37 = vshrl.u32 %v1731_v34, %v1794_v28 }
  0x9b   :  { %v344_v41 = vshrl.u32 %v1733_v40, %v341_v25  ;;  %v347_v46 = vshrl.u32 %v1734_v45, %v341_v25  ;;  %v349_v49 = vshll.u32 %v1734_v45, %v340_v23  ;;  %v350_v50 = vshrl.u32 %v1729_v26, %v341_v25 }
  0x9c   :  { %v354_v42 = vor.u32 %v353_v32, %v352_v27  ;;  %v357_v43 = vor.u32 %v356_v35, %v355_v33  ;;  %v509_v53 = vshll.u32 %v1730_v31, %v1790_v24  ;;  %vm358_vm3 = vcmp.lt.s32.totalorder %v1788_v22, 1 }
  0x9d   :  { %v345_v48 = vor.u32 %v344_v41, %v343_v39  ;;  %v348_v54 = vor.u32 %v347_v46, %v346_v44  ;;  %v351_v56 = vor.u32 %v350_v50, %v349_v49  ;;  %v1817_v58 = vor.u32 %v507_v36, %v506_v47 }
  0x9e   :  { %v367_v51 = vsel %vm361_vm2, %v354_v42, 920167782  ;;  %v371_v52 = vsel %vm361_vm2, %v357_v43, 1326507024  ;;  %v511_v59 = vor.u32 %v510_v37, %v509_v53  ;;  %vm360_vm4 = vcmp.lt.s32.totalorder %v1788_v22, 3 }
  0x9f   :  { %v366_v60 = vsel %vm358_vm3, %v345_v48, %v348_v54  ;;  %vm359_vm5 = vcmp.lt.s32.totalorder %v1788_v22, 2  ;;  %v368_v61 = vsel %vm360_vm4, %v351_v56, %v367_v51  ;;  %v370_v62 = vsel %vm358_vm3, %v348_v54, %v351_v56 }
  0xa0   :  { %v372_v63 = vsel %vm360_vm4, %v354_v42, %v371_v52  ;;  %v342_v3 = vshrl.u32 %v1732_v38, %v341_v25  ;;  %v363_v4 = vsel %vm361_vm2, %v351_v56, 2102212464  ;;  %v369_v5 = vsel %vm359_vm5, %v366_v60, %v368_v61 }
  0xa1   :  { %v373_v6 = vsel %vm359_vm5, %v370_v62, %v372_v63  ;;  %vm515_vm6 = vcmp.lt.s32.totalorder %v1813_v55, 4  ;;  %v399_v11 = vand.u32 65535, %v369_v5  ;;  %v400_v15 = vshrl.u32 %v369_v5, 16 }
  0xa2   :  { %v377_v9 = vand.u32 65535, %v373_v6  ;;  %v378_v10 = vshrl.u32 %v373_v6, 16  ;;  %v521_v12 = vsel %vm515_vm6, %v1817_v58, 920167782  ;;  %v525_v13 = vsel %vm515_vm6, %v511_v59, 1326507024 }
  0xa3   :  { %v362_v14 = vsel %vm358_vm3, %v342_v3, %v345_v48  ;;  %v364_v16 = vsel %vm360_vm4, %v348_v54, %v363_v4  ;;  %v497_v19 = vshll.u32 %v1732_v38, %v1790_v24  ;;  %v402_v21 = vmul.u32 %v400_v15, %v375_v29 }
  0xa4   :  { %v380_v17 = vmul.u32 %v378_v10, %v375_v29  ;;  %v381_v18 = vmul.u32 %v377_v9, %v376_v57  ;;  %v403_v23 = vmul.u32 %v399_v11, %v376_v57  ;;  %v498_v25 = vshrl.u32 %v1733_v40, %v1794_v28 }
  0xa5   :  { %v500_v27 = vshll.u32 %v1733_v40, %v1790_v24  ;;  %v379_v31 = vmul.u32 %v377_v9, %v375_v29  ;;  %v382_v32 = vmul.u32 %v378_v10, %v376_v57  ;;  %v401_v34 = vmul.u32 %v399_v11, %v375_v29 }
  0xa6   :  { %v383_v33 = vshll.u32 %v380_v17, 16  ;;  %v384_v35 = vshrl.u32 %v380_v17, 16  ;;  %v385_v36 = vshll.u32 %v381_v18, 16  ;;  %v404_v37 = vmul.u32 %v400_v15, %v376_v57 }
  0xa7   :  { %v405_v39 = vshll.u32 %v402_v21, 16  ;;  %v407_v42 = vshll.u32 %v403_v23, 16  ;;  %v501_v43 = vshrl.u32 %v1734_v45, %v1794_v28  ;;  %v1853_v47 = vor.u32 %v498_v25, %v497_v19 }
  0xa8   :  { %vm387_vm7 = vc.u32 %v379_v31, %v383_v33  ;;  %v389_v41 = vadd.s32 %v383_v33, %v379_v31  ;;  %v386_v49 = vshrl.u32 %v381_v18, 16  ;;  %v503_v54 = vshll.u32 %v1734_v45, %v1790_v24 }
  0xa9   :  { %v388_v44 = vsel %vm387_vm7, 1, %v1728_v0  ;;  %vm409_vm8 = vc.u32 %v401_v34, %v405_v39  ;;  %v411_v46 = vadd.s32 %v405_v39, %v401_v34  ;;  %v1856_v48 = vor.u32 %v501_v43, %v500_v27 }
  0xaa   :  { %v390_v40 = vadd.s32 %v388_v44, %v382_v32  ;;  %vm391_vm9 = vc.u32 %v389_v41, %v385_v36  ;;  %v410_v29 = vsel %vm409_vm8, 1, %v1728_v0  ;;  %v504_v56 = vshrl.u32 %v1729_v26, %v1794_v28 }
  0xab   :  { %v392_v50 = vsel %vm391_vm9, 1, %v1728_v0  ;;  %v412_v51 = vadd.s32 %v410_v29, %v404_v37  ;;  %vm413_vm10 = vc.u32 %v411_v46, %v407_v42  ;;  %v406_v57 = vshrl.u32 %v402_v21, 16 }
  0xac   :  { %v394_v52 = vadd.s32 %v392_v50, %v390_v40  ;;  %v414_v53 = vsel %vm413_vm10, 1, %v1728_v0  ;;  %vm512_vm11 = vcmp.lt.s32.totalorder %v1813_v55, 1  ;;  %vm514_vm12 = vcmp.lt.s32.totalorder %v1813_v55, 3 }
  0xad   :  { %v416_v59 = vadd.s32 %v414_v53, %v412_v51  ;;  %v505_v62 = vor.u32 %v504_v56, %v503_v54  ;;  %v520_v63 = vsel %vm512_vm11, %v1853_v47, %v1856_v48  ;;  %v526_v24 = vsel %vm514_vm12, %v1817_v58, %v525_v13 }
  0xae   :  { %v395_v61 = vadd.s32 %v394_v52, %v384_v35  ;;  %v408_v26 = vshrl.u32 %v403_v23, 16  ;;  %v1875_v45 = vadd.s32 %v411_v46, %v407_v42  ;;  %vm513_vm13 = vcmp.lt.s32.totalorder %v1813_v55, 2 }
  0xaf   :  { %v1866_v60 = vpop.f32.mrf.mxu0  ;;  %v417_v3 = vadd.s32 %v416_v59, %v406_v57  ;;  %v522_v5 = vsel %vm514_vm12, %v505_v62, %v521_v12  ;;  %v524_v6 = vsel %vm512_vm11, %v1856_v48, %v505_v62  ;;  %v365_v9 = vsel %vm359_vm5, %v362_v14, %v364_v16 }
  0xb0   :  { %v1877_v4 = vadd.s32 %v395_v61, %v386_v49  ;;  %v523_v58 = vsel %vm513_vm13, %v520_v63, %v522_v5  ;;  %v527_v11 = vsel %vm513_vm13, %v524_v6, %v526_v24  ;;  %v529_v13 = vand.u32 65535, %v1797_v30  ;;  %v1918_v55 = vpop.f32.mrf.mxu1 }
  0xb1   :  { %v418_v10 = vadd.s32 %v417_v3, %v408_v26  ;;  %v530_v12 = vshrl.u32 %v1797_v30, 16  ;;  %v531_v15 = vand.u32 65535, %v527_v11  ;;  %v532_v18 = vshrl.u32 %v527_v11, 16 }
  0xb2   :  { %vm421_vm14 = vc.u32 %v1877_v4, %v1875_v45  ;;  %v553_v19 = vand.u32 65535, %v523_v58  ;;  %v554_v22 = vshrl.u32 %v523_v58, 16  ;;  %v419_v14 = vmul.u32 %v1786_v20, %v365_v9 }
  0xb3   :  { %v422_v17 = vadd.s32 1, %v418_v10  ;;  %v534_v21 = vmul.u32 %v532_v18, %v529_v13  ;;  %v535_v23 = vmul.u32 %v531_v15, %v530_v12  ;;  %v533_v32 = vmul.u32 %v531_v15, %v529_v13 }
  0xb4   :  { %v556_v27 = vmul.u32 %v554_v22, %v529_v13  ;;  %v557_v34 = vmul.u32 %v553_v19, %v530_v12  ;;  %v536_v36 = vmul.u32 %v532_v18, %v530_v12  ;;  %v555_v37 = vmul.u32 %v553_v19, %v529_v13 }
  0xb5   :  { %v423_v16 = vsel %vm421_vm14, %v422_v17, %v418_v10  ;;  %v537_v33 = vshll.u32 %v534_v21, 16  ;;  %v539_v41 = vshll.u32 %v535_v23, 16  ;;  %v558_v43 = vmul.u32 %v554_v22, %v530_v12 }
  0xb6   :  { %v424_v25 = vadd.s32 %v423_v16, %v419_v14  ;;  %v559_v39 = vshll.u32 %v556_v27, 16  ;;  %v561_v29 = vshll.u32 %v557_v34, 16  ;;  %v538_v53 = vshrl.u32 %v534_v21, 16 }
  0xb7   :  { %v163_v31 = vpop.f32.mrf.mxu0  ;;  %vm541_vm15 = vc.u32 %v533_v32, %v537_v33  ;;  %v543_v42 = vadd.s32 %v537_v33, %v533_v32  ;;  %v496_v57 = vshrl.u32 %v1732_v38, %v1794_v28  ;;  %v517_v59 = vsel %vm515_vm6, %v505_v62, 2102212464 }
  0xb8   :  { %v425_v35 = vadd.s32 536870912, %v424_v25  ;;  %v542_v20 = vsel %vm541_vm15, 1, %v1728_v0  ;;  %vm563_vm0 = vc.u32 %v555_v37, %v559_v39  ;;  %v565_v46 = vadd.s32 %v559_v39, %v555_v37  ;;  %v176_v37 = vpop.f32.mrf.mxu1 }
  0xb9   :  { %v544_v40 = vadd.s32 %v542_v20, %v536_v36  ;;  %vm545_vm1 = vc.u32 %v543_v42, %v539_v41  ;;  %v564_v49 = vsel %vm563_vm0, 1, %v1728_v0  ;;  %v540_v63 = vshrl.u32 %v535_v23, 16 }
  0xba   :  { %v1896_v44 = vshrl.u32 %v425_v35, 30  ;;  %v546_v51 = vsel %vm545_vm1, 1, %v1728_v0  ;;  %v566_v52 = vadd.s32 %v564_v49, %v558_v43  ;;  %vm567_vm2 = vc.u32 %v565_v46, %v561_v29 }
  0xbb   :  { %v548_v54 = vadd.s32 %v546_v51, %v544_v40  ;;  %v568_v61 = vsel %vm567_vm2, 1, %v1728_v0  ;;  %v560_v26 = vshrl.u32 %v556_v27, 16  ;;  %v516_v6 = vsel %vm512_vm11, %v496_v57, %v1853_v47  ;;  %v1624_v51 = vld [vmem:[#allocation6 + $0xd8] sm:$0xff] }
  0xbc   :  { %v427_v50 = vshll.u32 %v1896_v44, 30  ;;  %v570_v3 = vadd.s32 %v568_v61, %v566_v52  ;;  %v518_v9 = vsel %vm514_vm12, %v1856_v48, %v517_v59  ;;  %v562_v38 = vshrl.u32 %v557_v34, 16  ;;  %v1600_v52 = vld [vmem:[#allocation6 + $0x18] sm:$0xff]  ;;  %1141 = vmatpush.bf16.msrb.mxu1 %v1624_v51 }
  0xbd   :  { %v549_v24 = vadd.s32 %v548_v54, %v538_v53  ;;  %v569_v0 = vadd.s32 %v565_v46, %v561_v29  ;;  %v519_v13 = vsel %vm513_vm13, %v516_v6, %v518_v9  ;;  %v420_v48 = vadd.s32 %v1875_v45, %v1877_v4  ;;  %v1608_v57 = vld [vmem:[#allocation6 + $0x58] sm:$0xff]  ;;  %1250 = vmatpush.bf16.msrb.mxu2 %v1600_v52 }
  0xbe   :  { %v428_v56 = vsub.s32 %v424_v25, %v427_v50  ;;  %v571_v10 = vadd.s32 %v570_v3, %v560_v26  ;;  %v573_v47 = vmul.u32 %v1797_v30, %v519_v13  ;;  %vm328_vm7 = vcmp.lt.s32.totalorder %v1774_v1, 0  ;;  %v1616_v50 = vld [vmem:[#allocation6 + $0x98] sm:$0xff]  ;;  %v1941_v26 = vpop.f32.mrf.mxu3  ;;  %1263 = vmatpush.bf16.msrb.mxu3 %v1608_v57 }
  0xbf   :  { %v550_v28 = vadd.s32 %v549_v24, %v540_v63  ;;  %vm1926_vm8 = vcmp.le.f32.partialorder %v326_v7, 0.7853982  ;;  %v450_v46 = vsub.s32 4, %v1896_v44  ;;  %v1939_v24 = vpop.f32.mrf.mxu2  ;;  %1128 = vmatpush.bf16.msrb.mxu0 %v1616_v50  ;;  %vm482_vm10 = vcmp.lt.s32.totalorder %v1776_v2, 0 }
  0xc0   :  { %vm429_vm3 = vcmp.lt.s32.totalorder %v428_v56, 0  ;;  %v430_v5 = vsub.s32 0, %v428_v56  ;;  %v572_v11 = vadd.s32 %v571_v10, %v562_v38  ;;  %v1615_v10 = vld [vmem:[#allocation6 + $0x90] sm:$0xff]  ;;  %vm1949_vm13 = vcmp.le.f32.partialorder %v480_v8, 0.7853982 }
  0xc1   :  { %vm575_vm4 = vc.u32 %v550_v28, %v569_v0  ;;  %v451_v7 = vsel %vm328_vm7, %v450_v46, %v1896_v44  ;;  %v574_v59 = vadd.s32 %v569_v0, %v550_v28  ;;  %v1623_v28 = vld [vmem:[#allocation6 + $0xd0] sm:$0xff]  ;;  %vm469_vm2 = vweird.f32 %v1774_v1 }
  0xc2   :  { %v431_v62 = vsel %vm429_vm3, %v430_v5, %v428_v56  ;;  %v576_v15 = vadd.s32 1, %v572_v11  ;;  %v453_v44 = vsel %vm1926_vm8, 0, %v451_v7  ;;  %1142 = vmatpush.bf16.msrb.mxu1 %v1623_v28 }
  0xc3   :  { %v432_v58 = vclz %v431_v62  ;;  %v1599_v62 = vld [vmem:[#allocation6 + $0x10] sm:$0xff]  ;;  %1129 = vmatpush.bf16.msrb.mxu0 %v1615_v10 }
  0xc4   :  { %v577_v18 = vsel %vm575_vm4, %v576_v15, %v572_v11  ;;  %v1607_v11 = vld [vmem:[#allocation6 + $0x50] sm:$0xff]  ;;  %1251 = vmatpush.bf16.msrb.mxu2 %v1599_v62 }
  0xc5   :  { %v1426_v12 = vadd.s32 4294967294, %v432_v58  ;;  %v578_v14 = vadd.s32 %v577_v18, %v573_v47  ;;  %1264 = vmatpush.bf16.msrb.mxu3 %v1607_v11 }
  0xc7   :  { %vm1427_vm5 = vcmp.lt.s32.totalorder %v1426_v12, 0  ;;  %v579_v25 = vadd.s32 536870912, %v578_v14 }
  0xc8   :  { %v435_v17 = vsel %vm1427_vm5, 0, %v1426_v12 }
  0xc9   :  { %v436_v19 = vsub.s32 32, %v435_v17  ;;  %v440_v22 = vsub.s32 4294967266, %v435_v17  ;;  %v437_v16 = vshll.u32 %v428_v56, %v435_v17  ;;  %v1920_v32 = vshrl.u32 %v579_v25, 30 }
  0xca   :  { %v778_v17 = vadd.s32 3, %v453_v44 }
  0xcb   :  { %v438_v21 = vshrl.u32 %v420_v48, %v436_v19  ;;  %v441_v23 = vadd.s32 127, %v440_v22  ;;  %v581_v30 = vshll.u32 %v1920_v32, 30  ;;  %v1614_v48 = vld [vmem:[#allocation6 + $0x88] sm:$0xff] }
  0xcc   :  { %v1622_v19 = vld [vmem:[#allocation6 + $0xc8] sm:$0xff]  ;;  %1130 = vmatpush.bf16.msrb.mxu0 %v1614_v48 }
  0xcd   :  { %v439_v27 = vor.u32 %v438_v21, %v437_v16  ;;  %v442_v31 = vshll.u32 %v441_v23, 23  ;;  %v582_v36 = vsub.s32 %v578_v14, %v581_v30  ;;  %v1598_v22 = vld [vmem:[#allocation6 + $0x8] sm:$0xff]  ;;  %v470_v23 = vand.u32 3, %v453_v44  ;;  %1143 = vmatpush.bf16.msrb.mxu1 %v1622_v19 }
  0xce   :  { %v1606_v21 = vld [vmem:[#allocation6 + $0x48] sm:$0xff]  ;;  %1252 = vmatpush.bf16.msrb.mxu2 %v1598_v22 }
  0xcf   :  { %v443_v33 = vor.u32 4788187, %v442_v31  ;;  %v446_v35 = vcvt.s32.f32 %v439_v27  ;;  %vm583_vm6 = vcmp.lt.s32.totalorder %v582_v36, 0  ;;  %v584_v4 = vsub.s32 0, %v582_v36  ;;  %v286_v31 = vpop.f32.mrf.mxu2  ;;  %1265 = vmatpush.bf16.msrb.mxu3 %v1606_v21 }
  0xd0   :  { %vm471_vm11 = vcmp.lt.s32.totalorder %v470_v23, 2  ;;  %vm472_vm12 = vcmp.eq.s32.totalorder %v470_v23, 0  ;;  %vm475_vm14 = vcmp.eq.s32.totalorder %v470_v23, 2 }
  0xd1   :  { %v444_v34 = vand.u32 2147483647, %v443_v33  ;;  %v585_v41 = vsel %vm583_vm6, %v584_v4, %v582_v36  ;;  %v299_v33 = vpop.f32.mrf.mxu3  ;;  %v1597_v4 = vld [vmem:[#allocation6] sm:$0xff] }
  0xd2   :  { %v586_v42 = vclz %v585_v41  ;;  %1253 = vmatpush.bf16.msrb.mxu2 %v1597_v4 }
  0xd3   :  { %v447_v45 = vmul.f32 %v446_v35, %v444_v34  ;;  %v779_v35 = vand.u32 3, %v778_v17 }
  0xd4   :  { %v1429_v29 = vadd.s32 4294967294, %v586_v42 }
  0xd5   :  { %v448_v39 = vxor.u32 2147483648, %v447_v45  ;;  %vm780_vm15 = vcmp.lt.s32.totalorder %v779_v35, 2  ;;  %vm781_vm0 = vcmp.eq.s32.totalorder %v779_v35, 0  ;;  %vm784_vm1 = vcmp.eq.s32.totalorder %v779_v35, 2 }
  0xd6   :  { %vm1430_vm9 = vcmp.lt.s32.totalorder %v1429_v29, 0 }
  0xd7   :  { %v449_v20 = vsel %vm328_vm7, %v448_v39, %v447_v45  ;;  %v589_v56 = vsel %vm1430_vm9, 0, %v1429_v29  ;;  %v1621_v45 = vld [vmem:[#allocation6 + $0xc0] sm:$0xff]  ;;  %vm623_vm9 = vweird.f32 %v1776_v2 }
  0xd8   :  { %v1934_v40 = vsel %vm1926_vm8, %v1774_v1, %v449_v20  ;;  %v590_v61 = vsub.s32 32, %v589_v56  ;;  %v594_v63 = vsub.s32 4294967266, %v589_v56  ;;  %v591_v6 = vshll.u32 %v582_v36, %v589_v56  ;;  %v1613_v36 = vld [vmem:[#allocation6 + $0x80] sm:$0xff]  ;;  %1144 = vmatpush.bf16.msrb.mxu1 %v1621_v45 }
  0xd9   :  { %v454_v49 = vmul.f32 %v1934_v40, %v1934_v40  ;;  %v1605_v39 = vld [vmem:[#allocation6 + $0x40] sm:$0xff]  ;;  %1131 = vmatpush.bf16.msrb.mxu0 %v1613_v36 }
  0xda   :  { %v592_v9 = vshrl.u32 %v574_v59, %v590_v61  ;;  %v595_v38 = vadd.s32 127, %v594_v63  ;;  %1266 = vmatpush.bf16.msrb.mxu3 %v1605_v39 }
  0xdb   :  { %v455_v53 = vmul.f32 -0.001358992, %v454_v49  ;;  %v462_v54 = vmul.f32 -0.00019511016, %v454_v49 }
  0xdc   :  { %v593_v13 = vor.u32 %v592_v9, %v591_v6  ;;  %v596_v12 = vshll.u32 %v595_v38, 23 }
  0xdd   :  { %v456_v3 = vadd.f32 0.041655596, %v455_v53  ;;  %v463_v5 = vadd.f32 0.008332121, %v462_v54 }
  0xde   :  { %v597_v18 = vor.u32 4788187, %v596_v12  ;;  %v600_v27 = vcvt.s32.f32 %v593_v13 }
  0xdf   :  { %v457_v58 = vmul.f32 %v456_v3, %v454_v49  ;;  %v464_v0 = vmul.f32 %v463_v5, %v454_v49 }
  0xe0   :  { %v598_v25 = vand.u32 2147483647, %v597_v18 }
  0xe1   :  { %v458_v15 = vadd.f32 -0.4999988, %v457_v58  ;;  %v465_v47 = vadd.f32 -0.16666654, %v464_v0 }
  0xe2   :  { %v601_v37 = vmul.f32 %v600_v27, %v598_v25 }
  0xe3   :  { %v459_v14 = vmul.f32 %v458_v15, %v454_v49  ;;  %v466_v16 = vmul.f32 %v465_v47, %v454_v49  ;;  %v604_v49 = vsub.s32 4, %v1920_v32 }
  0xe4   :  { %v602_v20 = vxor.u32 2147483648, %v601_v37 }
  0xe5   :  { %v460_v30 = vadd.f32 1.0, %v459_v14  ;;  %v467_v34 = vadd.f32 1.0, %v466_v16  ;;  %v605_v61 = vsel %vm482_vm10, %v604_v49, %v1920_v32 }
  0xe6   :  { %v603_v29 = vsel %vm482_vm10, %v602_v20, %v601_v37  ;;  %v607_v10 = vsel %vm1949_vm13, 0, %v605_v61 }
  0xe7   :  { %v468_v41 = vmul.f32 %v467_v34, %v1934_v40  ;;  %v476_v42 = vxor.u32 2147483648, %v460_v30  ;;  %v606_v52 = vsel %vm1949_vm13, %v1776_v2, %v603_v29  ;;  %v933_v15 = vadd.s32 3, %v607_v10 }
  0xe8   :  { %v608_v54 = vmul.f32 %v606_v52, %v606_v52  ;;  %v624_v48 = vand.u32 3, %v607_v10 }
  0xe9   :  { %v473_v46 = vxor.u32 2147483648, %v468_v41  ;;  %v477_v40 = vsel %vm475_vm14, %v476_v42, %v468_v41  ;;  %v786_v51 = vsel %vm784_vm1, %v476_v42, %v468_v41 }
  0xea   :  { %v609_v63 = vmul.f32 -0.001358992, %v608_v54  ;;  %v616_v3 = vmul.f32 -0.00019511016, %v608_v54  ;;  %vm625_vm3 = vcmp.lt.s32.totalorder %v624_v48, 2  ;;  %vm626_vm4 = vcmp.eq.s32.totalorder %v624_v48, 0 }
  0xeb   :  { %v474_v8 = vsel %vm472_vm12, %v460_v30, %v473_v46  ;;  %v783_v50 = vsel %vm781_vm0, %v460_v30, %v473_v46  ;;  %vm629_vm5 = vcmp.eq.s32.totalorder %v624_v48, 2 }
  0xec   :  { %v478_v7 = vsel %vm471_vm11, %v474_v8, %v477_v40  ;;  %v787_v53 = vsel %vm780_vm15, %v783_v50, %v786_v51  ;;  %v610_v1 = vadd.f32 0.041655596, %v609_v63  ;;  %v617_v9 = vadd.f32 0.008332121, %v616_v3 }
  0xed   :  { %v479_v56 = vsel %vm469_vm2, nan, %v478_v7  ;;  %v788_v57 = vsel %vm469_vm2, nan, %v787_v53 }
  0xee   :  { %v944_v59 = vsub.f32 0.0, %v788_v57  ;;  %v946_v5 = vmul.f32 %v479_v56, %v1866_v60  ;;  %v956_v44 = vmul.f32 %v479_v56, %v1939_v24  ;;  %v611_v28 = vmul.f32 %v610_v1, %v608_v54 }
  0xef   :  { %v618_v62 = vmul.f32 %v617_v9, %v608_v54 }
  0xf0   :  { %v954_v6 = vmul.f32 %v944_v59, %v1866_v60  ;;  %v948_v38 = vmul.f32 %v944_v59, %v1939_v24  ;;  %v612_v32 = vadd.f32 -0.4999988, %v611_v28  ;;  %v934_v24 = vand.u32 3, %v933_v15 }
  0xf1   :  { %v619_v11 = vadd.f32 -0.16666654, %v618_v62 }
  0xf2   :  { %v950_v58 = vsub.f32 %v946_v5, %v948_v38  ;;  %v958_v0 = vadd.f32 %v956_v44, %v954_v6  ;;  %v613_v47 = vmul.f32 %v612_v32, %v608_v54  ;;  %vm935_vm6 = vcmp.lt.s32.totalorder %v934_v24, 2 }
  0xf3   :  { %v620_v17 = vmul.f32 %v619_v11, %v608_v54  ;;  %vm936_vm7 = vcmp.eq.s32.totalorder %v934_v24, 0  ;;  %vm939_vm8 = vcmp.eq.s32.totalorder %v934_v24, 2 }
  0xf4   :  { %v960_v13 = vpack.c.bf16 %v958_v0, %v958_v0  ;;  %v952_v12 = vpack.c.bf16 %v950_v58, %v950_v58  ;;  %v614_v60 = vadd.f32 1.0, %v613_v47 }
  0xf5   :  { %v621_v18 = vadd.f32 1.0, %v620_v17 }
  0xf6   :  { %1132 = vmatmul.bf16.vlgmr.msrb.gmra.mxu0 %v960_v13  ;;  %1254 = vmatmul.bf16.vlgmr.msrb.gmra.mxu2 %v952_v12  ;;  %v630_v22 = vxor.u32 2147483648, %v614_v60 }
  0xf7   :  { %v622_v19 = vmul.f32 %v621_v18, %v606_v52 }
  0xf9   :  { %v627_v14 = vxor.u32 2147483648, %v622_v19  ;;  %v631_v21 = vsel %vm629_vm5, %v630_v22, %v622_v19  ;;  %v941_v25 = vsel %vm939_vm8, %v630_v22, %v622_v19 }
  0xfb   :  { %v628_v16 = vsel %vm626_vm4, %v614_v60, %v627_v14  ;;  %v938_v23 = vsel %vm936_vm7, %v614_v60, %v627_v14 }
  0xfc   :  { %v632_v27 = vsel %vm625_vm3, %v628_v16, %v631_v21  ;;  %v942_v31 = vsel %vm935_vm6, %v938_v23, %v941_v25 }
  0xfd   :  { %v633_v33 = vsel %vm623_vm9, nan, %v632_v27  ;;  %v943_v30 = vsel %vm623_vm9, nan, %v942_v31 }
  0xfe   :  { %v945_v34 = vsub.f32 0.0, %v943_v30  ;;  %v947_v35 = vmul.f32 %v633_v33, %v1918_v55  ;;  %v957_v4 = vmul.f32 %v633_v33, %v1941_v26 }
 0x100   :  { %v955_v36 = vmul.f32 %v945_v34, %v1918_v55  ;;  %v949_v45 = vmul.f32 %v945_v34, %v1941_v26 }
 0x102   :  { %v951_v37 = vsub.f32 %v947_v35, %v949_v45  ;;  %v959_v39 = vadd.f32 %v957_v4, %v955_v36 }
 0x104   :  { %v961_v41 = vpack.c.bf16 %v959_v39, %v959_v39  ;;  %v953_v42 = vpack.c.bf16 %v951_v37, %v951_v37 }
 0x106   :  { %1145 = vmatmul.bf16.vlgmr.msrb.gmra.mxu1 %v961_v41  ;;  %1267 = vmatmul.bf16.vlgmr.msrb.gmra.mxu3 %v953_v42 }
 0x173   :  { %v1133_v2 = vpop.f32.mrf.mxu0 }
 0x179   :  { %v1255_v43 = vpop.f32.mrf.mxu2 }
 0x17b   :  { %v1135_v20 = vpop.f32.mrf.mxu0 }
 0x181   :  { %v1257_v46 = vpop.f32.mrf.mxu2 }
 0x183   :  { %v1146_v40 = vpop.f32.mrf.mxu1 }
 0x184   :  { %v1147_v29 = vadd.f32 %v1146_v40, %v1133_v2 }
 0x186   :  { %v1256_v49 = vadd.f32 %v1255_v43, %v1147_v29 }
 0x189   :  { %v1268_v55 = vpop.f32.mrf.mxu3 }
 0x18a   :  { %v1269_v26 = vadd.f32 %v1268_v55, %v1256_v49 }
 0x18b   :  { %v1148_v8 = vpop.f32.mrf.mxu1 }
 0x18c   :  { %1278 = vst [vmem:[#allocation8] sm:$0xff] %v1269_v26 }
 0x18d   :  { %1289 = dma.vmem_to_hbm [thread:$0]  %s1285_s30, 128, %s1287_s7, [#allocation5]  }
 0x191   :  { %v1270_v50 = vpop.f32.mrf.mxu3 }
 0x192   :  { %1720 = dma.done.wait [#allocation5], 128  }
 0x193   :  { %1721 = vsyncadd [#allocation5], 4294967168 }
 0x194   :  { %1294 = vsyncpa [#allocation4], 1 }
 0x195   :  { %1295 = vsyncpa [#allocation7], 1 }
 0x196   :  { %1296 = vsyncpa [#allocation5], 1 }

</bundles_post_ra>
